<compile_context>
chip_gen: v6e
topology: v6e:2x2x1
jax: 0.10.0
libtpu: 0.0.40
codegen_flags: <defaults>
</compile_context>

<pallas_src>
import functools

import numpy as np
import jax
import jax.numpy as jnp
from jax import lax
from jax.experimental import pallas as pl
from jax.experimental.pallas import tpu as pltpu

OUT_PAD = 128   # lane-dense output width; logits live in columns [0:2]
B_PAD = 8       # sublane-padded batch: full-tile elementwise / matmul / stores


# ----------------------------- Pallas kernel --------------------------------
def _bilstm_fc_kernel(tok_ref,   # (B, T)        int32  SMEM   raw token ids
                      emb_ref,   # (Vpad, 16H)   f32    VMEM   emb @ wih (+bias in fwd half)
                      whh_ref,   # (2H, 8H)      bf16   VMEM   block-diag recurrent weights
                      wfc_ref,   # (2H, OUT_PAD) f32    VMEM   fc weights (cols >= 2 zero)
                      bfc_ref,   # (1, OUT_PAD)  f32    VMEM   fc bias    (cols >= 2 zero)
                      out_ref,   # (BP, OUT_PAD) f32    VMEM
                      gx_ref,    # (T*BP, 8H)    f32    VMEM scratch (hoisted gate inputs)
                      *, T, B, BP, H):
    G = 8 * H          # packed gate width (4 gates x 2 directions)
    S = 2 * H          # per-gate slice width = one full lane tile (128)
    v_max = emb_ref.shape[0] - 1

    # ---- 1) gather pre-projected gate inputs; fwd consumes time t, bwd T-1-t.
    #      The fwd/bwd add is hoisted out of the recurrence; padded rows stay 0.
    gx_ref[...] = jnp.zeros_like(gx_ref)
    for t in range(T):
        for b in range(B):
            tf = jnp.clip(tok_ref[b, t], 0, v_max)           # clamp: OOB ids -> safe row
            tb = jnp.clip(tok_ref[b, T - 1 - t], 0, v_max)
            gx_ref[pl.ds(t * BP + b, 1), :] = (
                emb_ref[pl.ds(tf, 1), :G] + emb_ref[pl.ds(tb, 1), G:])

    # ---- 2) fully-unrolled bidirectional recurrence: ONE (BP,2H)@(2H,8H) bf16
    #      matmul per step (gate columns interleaved [i_f|i_b|f_f|f_b|g_f|g_b|o_f|o_b]
    #      so every sigmoid/tanh covers a full 128-lane slice); gate math f32.
    whh = whh_ref[...]                                        # (2H, 8H) bf16
    h = jnp.zeros((BP, S), jnp.float32)                       # [h_f | h_b]
    c = jnp.zeros((BP, S), jnp.float32)
    for t in range(T):
        gx = gx_ref[t * BP:(t + 1) * BP, :]                   # (BP, 8H), full tiles
        if t == 0:
            gates = gx                                        # h == 0 -> skip matmul
        else:
            gates = gx + jnp.dot(h.astype(jnp.bfloat16), whh,
                                 preferred_element_type=jnp.float32)
        i_g = jax.nn.sigmoid(gates[:, 0 * S:1 * S])           # [i_f | i_b]
        g_g = jnp.tanh(gates[:, 2 * S:3 * S])                 # [g_f | g_b]
        o_g = jax.nn.sigmoid(gates[:, 3 * S:4 * S])           # [o_f | o_b]
        if t == 0:
            c = i_g * g_g                                     # c == 0 -> skip f*c
        else:
            f_g = jax.nn.sigmoid(gates[:, 1 * S:2 * S])       # [f_f | f_b]
            c = f_g * c + i_g * g_g
        h = o_g * jnp.tanh(c)

    # ---- 3) fc on h = [h_f | h_b] (concat is free); full-tile (BP,128) store --
    out_ref[...] = (jnp.dot(h, wfc_ref[...], preferred_element_type=jnp.float32)
                    + bfc_ref[...])


# --------------------------- Parameter packing -------------------------------
def _interleave_gates(w_f, w_b, H):
    """Interleave per-gate columns: [i_f, i_b, f_f, f_b, g_f, g_b, o_f, o_b]."""
    parts = []
    for k in range(4):
        parts.append(w_f[..., k * H:(k + 1) * H])
        parts.append(w_b[..., k * H:(k + 1) * H])
    return jnp.concatenate(parts, axis=-1)


def pack_params(params):
    """One-time repack of raw (PyTorch-layout) params into the kernel layout."""
    H = params["whh_f"].shape[0]
    G = 8 * H
    z_ih = jnp.zeros_like(params["wih_f"])
    z_hh = jnp.zeros_like(params["whh_f"])

    # input projection (E, 16H): fwd weights land in the fwd column block,
    # bwd weights in the bwd block; gate columns interleaved.
    wih_fwd = _interleave_gates(params["wih_f"], z_ih, H)          # (E, 8H)
    wih_bwd = _interleave_gates(z_ih, params["wih_b"], H)          # (E, 8H)
    wih_pack = jnp.concatenate([wih_fwd, wih_bwd], axis=1)         # (E, 16H)

    # pad vocab rows to a multiple of 8 (clean sublane layout for row gathers)
    emb = params["embedding"].astype(jnp.float32)
    V = emb.shape[0]
    emb = jnp.pad(emb, ((0, (-V) % 8), (0, 0)))                    # (Vpad, E)

    # fold embedding through the input projection (one-time, high precision)
    emb_proj = jnp.dot(emb, wih_pack, precision=lax.Precision.HIGHEST)  # (Vpad, 16H)

    # fold BOTH directions' biases into the fwd half so they're added once/step
    b_half = _interleave_gates(params["b_f"], params["b_b"], H)    # (1, 8H)
    emb_proj = emb_proj.at[:, :G].add(b_half)

    # block-diagonal recurrent weights (2H, 8H), gate-interleaved; bf16 streaming
    whh_top = _interleave_gates(params["whh_f"], z_hh, H)          # (H, 8H)
    whh_bot = _interleave_gates(z_hh, params["whh_b"], H)          # (H, 8H)
    whh_blk = jnp.concatenate([whh_top, whh_bot], axis=0).astype(jnp.bfloat16)

    # fc padded lane-dense; h layout [h_f | h_b] matches torch.cat((h_n[-2], h_n[-1]), 1)
    wfc_pad = jnp.zeros((2 * H, OUT_PAD), jnp.float32).at[:, :2].set(params["wfc"])
    bfc_pad = jnp.zeros((1, OUT_PAD), jnp.float32).at[:, :2].set(params["bfc"])

    return {"emb_proj": emb_proj, "whh_blk": whh_blk,
            "wfc_pad": wfc_pad, "bfc_pad": bfc_pad}


# ------------------------------- Wrapper -------------------------------------
@jax.jit
def email_classifier_forward(tokens, packed):
    """tokens: (B, T) int32.  packed: output of pack_params.  -> (B, 2) f32 logits."""
    B, T = tokens.shape
    H = packed["whh_blk"].shape[0] // 2
    assert B <= B_PAD

    smem = pl.BlockSpec(memory_space=pltpu.MemorySpace.SMEM)
    vmem = pl.BlockSpec(memory_space=pltpu.MemorySpace.VMEM)
    kernel = functools.partial(_bilstm_fc_kernel, T=T, B=B, BP=B_PAD, H=H)

    out = pl.pallas_call(
        kernel,
        out_shape=jax.ShapeDtypeStruct((B_PAD, OUT_PAD), jnp.float32),
        in_specs=[smem, vmem, vmem, vmem, vmem],
        out_specs=vmem,
        scratch_shapes=[pltpu.VMEM((T * B_PAD, 8 * H), jnp.float32)],
    )(tokens.astype(jnp.int32), packed["emb_proj"], packed["whh_blk"],
      packed["wfc_pad"], packed["bfc_pad"])

    return out[:B, :2]


# --------------------------- Parameter init ----------------------------------
def init_params(key, vocab_size, embed_dim=64, hidden_dim=64):
    ks = jax.random.split(key, 12)
    s = 1.0 / np.sqrt(hidden_dim)      # PyTorch LSTM/Linear uniform init scale

    def u(k, shape, scale):
        return jax.random.uniform(k, shape, jnp.float32, -scale, scale)

    emb = jax.random.normal(ks[0], (vocab_size, embed_dim), jnp.float32)
    emb = emb.at[0].set(0.0)           # padding_idx=0

    params = {
        "embedding": emb,
        # forward direction (gate order i, f, g, o)
        "wih_f": u(ks[1], (embed_dim, 4 * hidden_dim), s),
        "whh_f": u(ks[2], (hidden_dim, 4 * hidden_dim), s),
        "b_f":   u(ks[3], (1, 4 * hidden_dim), s) + u(ks[4], (1, 4 * hidden_dim), s),
        # backward direction
        "wih_b": u(ks[5], (embed_dim, 4 * hidden_dim), s),
        "whh_b": u(ks[6], (hidden_dim, 4 * hidden_dim), s),
        "b_b":   u(ks[7], (1, 4 * hidden_dim), s) + u(ks[8], (1, 4 * hidden_dim), s),
        # fc: Linear(2H -> 2)
        "wfc":   u(ks[9], (2 * hidden_dim, 2), 1.0 / np.sqrt(2 * hidden_dim)),
        "bfc":   u(ks[10], (1, 2), 1.0 / np.sqrt(2 * hidden_dim)),
    }
    return params


# --------------------------- Pure-JAX reference -------------------------------
def reference_forward(tokens, params):
    emb = params["embedding"][tokens].astype(jnp.float32)   # (B, T, E)
    B, T, E = emb.shape
    H = params["whh_f"].shape[0]

    def run_dir(x_seq, wih, whh, b):
        def cell(carry, xt):
            h, c = carry
            gates = xt @ wih + h @ whh + b
            i = jax.nn.sigmoid(gates[:, 0:H])
            f = jax.nn.sigmoid(gates[:, H:2 * H])
            g = jnp.tanh(gates[:, 2 * H:3 * H])
            o = jax.nn.sigmoid(gates[:, 3 * H:4 * H])
            c = f * c + i * g
            h = o * jnp.tanh(c)
            return (h, c), None
        init = (jnp.zeros((B, H), jnp.float32), jnp.zeros((B, H), jnp.float32))
        (h, _), _ = lax.scan(cell, init, jnp.transpose(x_seq, (1, 0, 2)))
        return h

    hf = run_dir(emb, params["wih_f"], params["whh_f"], params["b_f"])
    hb = run_dir(emb[:, ::-1, :], params["wih_b"], params["whh_b"], params["b_b"])
    h_cat = jnp.concatenate([hf, hb], axis=1)
    return h_cat @ params["wfc"] + params["bfc"]


# ---------------------------------- Main --------------------------------------
if __name__ == "__main__":
    VOCAB, EMBED, HIDDEN = 50, 64, 64
    B, T = 2, 8

    key = jax.random.PRNGKey(0)
    k_tok, k_par = jax.random.split(key)
    tokens = jax.random.randint(k_tok, (B, T), 0, VOCAB, dtype=jnp.int32)
    params = init_params(k_par, VOCAB, EMBED, HIDDEN)
    packed = pack_params(params)          # one-time weight repack (zero runtime cost)

    out = email_classifier_forward(tokens, packed)
    out = jax.block_until_ready(out)

    ref = jax.block_until_ready(reference_forward(tokens, params))
    assert out.shape == (B, 2)
    np.testing.assert_allclose(np.asarray(out), np.asarray(ref), rtol=1e-2, atol=1e-2)

    print("KERNEL_OK")
</pallas_src>

<mosaic_0001>
module attributes {stable_mosaic.version = 11 : i64} {
  func.func @_bilstm_fc_kernel(%arg0: memref<2x8xi32, #tpu.memory_space<smem>>, %arg1: memref<56x1024xf32, #tpu.memory_space<vmem>>, %arg2: memref<128x512xbf16, #tpu.memory_space<vmem>>, %arg3: memref<128x128xf32, #tpu.memory_space<vmem>>, %arg4: memref<1x128xf32, #tpu.memory_space<vmem>>, %arg5: memref<8x128xf32, #tpu.memory_space<vmem>>, %arg6: memref<64x512xf32, #tpu.memory_space<vmem>>) attributes {dimension_semantics = [], scalar_prefetch = 0 : i64, scratch_operands = 1 : i64, tpu.core_type = #tpu.core_type<tc>} {
    %cst = arith.constant 0.000000e+00 : f32
    %0 = vector.broadcast %cst : f32 to vector<64x512xf32>
    %c0 = arith.constant 0 : index
    %c0_0 = arith.constant 0 : index
    %1 = vector.load %arg6[%c0, %c0_0] : memref<64x512xf32, #tpu.memory_space<vmem>>, vector<64x512xf32>
    tpu.vector_store %arg6[%c0, %c0_0], %0 {strides = array<i32>} : memref<64x512xf32, #tpu.memory_space<vmem>>, vector<64x512xf32>,
    %c0_1 = arith.constant 0 : index
    %c0_2 = arith.constant 0 : index
    %2 = memref.load %arg0[%c0_1, %c0_2] : memref<2x8xi32, #tpu.memory_space<smem>>
    %c0_i32 = arith.constant 0 : i32
    %c55_i32 = arith.constant 55 : i32
    %3 = arith.maxsi %c0_i32, %2 : i32
    %4 = arith.minsi %c55_i32, %3 : i32
    %c0_3 = arith.constant 0 : index
    %c7 = arith.constant 7 : index
    %5 = memref.load %arg0[%c0_3, %c7] : memref<2x8xi32, #tpu.memory_space<smem>>
    %c0_i32_4 = arith.constant 0 : i32
    %c55_i32_5 = arith.constant 55 : i32
    %6 = arith.maxsi %c0_i32_4, %5 : i32
    %7 = arith.minsi %c55_i32_5, %6 : i32
    %8 = arith.index_cast %4 : i32 to index
    %c0_6 = arith.constant 0 : index
    %9 = vector.load %arg1[%8, %c0_6] : memref<56x1024xf32, #tpu.memory_space<vmem>>, vector<1x512xf32>
    %10 = arith.index_cast %7 : i32 to index
    %c512 = arith.constant 512 : index
    %11 = vector.load %arg1[%10, %c512] : memref<56x1024xf32, #tpu.memory_space<vmem>>, vector<1x512xf32>
    %12 = arith.addf %9, %11 : vector<1x512xf32>
    %c0_7 = arith.constant 0 : index
    %c0_8 = arith.constant 0 : index
    %13 = vector.load %arg6[%c0_7, %c0_8] : memref<64x512xf32, #tpu.memory_space<vmem>>, vector<1x512xf32>
    tpu.vector_store %arg6[%c0_7, %c0_8], %12 {strides = array<i32>} : memref<64x512xf32, #tpu.memory_space<vmem>>, vector<1x512xf32>,
    %c1 = arith.constant 1 : index
    %c0_9 = arith.constant 0 : index
    %14 = memref.load %arg0[%c1, %c0_9] : memref<2x8xi32, #tpu.memory_space<smem>>
    %c0_i32_10 = arith.constant 0 : i32
    %c55_i32_11 = arith.constant 55 : i32
    %15 = arith.maxsi %c0_i32_10, %14 : i32
    %16 = arith.minsi %c55_i32_11, %15 : i32
    %c1_12 = arith.constant 1 : index
    %c7_13 = arith.constant 7 : index
    %17 = memref.load %arg0[%c1_12, %c7_13] : memref<2x8xi32, #tpu.memory_space<smem>>
    %c0_i32_14 = arith.constant 0 : i32
    %c55_i32_15 = arith.constant 55 : i32
    %18 = arith.maxsi %c0_i32_14, %17 : i32
    %19 = arith.minsi %c55_i32_15, %18 : i32
    %20 = arith.index_cast %16 : i32 to index
    %c0_16 = arith.constant 0 : index
    %21 = vector.load %arg1[%20, %c0_16] : memref<56x1024xf32, #tpu.memory_space<vmem>>, vector<1x512xf32>
    %22 = arith.index_cast %19 : i32 to index
    %c512_17 = arith.constant 512 : index
    %23 = vector.load %arg1[%22, %c512_17] : memref<56x1024xf32, #tpu.memory_space<vmem>>, vector<1x512xf32>
    %24 = arith.addf %21, %23 : vector<1x512xf32>
    %c1_18 = arith.constant 1 : index
    %c0_19 = arith.constant 0 : index
    %25 = vector.load %arg6[%c1_18, %c0_19] : memref<64x512xf32, #tpu.memory_space<vmem>>, vector<1x512xf32>
    tpu.vector_store %arg6[%c1_18, %c0_19], %24 {strides = array<i32>} : memref<64x512xf32, #tpu.memory_space<vmem>>, vector<1x512xf32>,
    %c0_20 = arith.constant 0 : index
    %c1_21 = arith.constant 1 : index
    %26 = memref.load %arg0[%c0_20, %c1_21] : memref<2x8xi32, #tpu.memory_space<smem>>
    %c0_i32_22 = arith.constant 0 : i32
    %c55_i32_23 = arith.constant 55 : i32
    %27 = arith.maxsi %c0_i32_22, %26 : i32
    %28 = arith.minsi %c55_i32_23, %27 : i32
    %c0_24 = arith.constant 0 : index
    %c6 = arith.constant 6 : index
    %29 = memref.load %arg0[%c0_24, %c6] : memref<2x8xi32, #tpu.memory_space<smem>>
    %c0_i32_25 = arith.constant 0 : i32
    %c55_i32_26 = arith.constant 55 : i32
    %30 = arith.maxsi %c0_i32_25, %29 : i32
    %31 = arith.minsi %c55_i32_26, %30 : i32
    %32 = arith.index_cast %28 : i32 to index
    %c0_27 = arith.constant 0 : index
    %33 = vector.load %arg1[%32, %c0_27] : memref<56x1024xf32, #tpu.memory_space<vmem>>, vector<1x512xf32>
    %34 = arith.index_cast %31 : i32 to index
    %c512_28 = arith.constant 512 : index
    %35 = vector.load %arg1[%34, %c512_28] : memref<56x1024xf32, #tpu.memory_space<vmem>>, vector<1x512xf32>
    %36 = arith.addf %33, %35 : vector<1x512xf32>
    %c8 = arith.constant 8 : index
    %c0_29 = arith.constant 0 : index
    %37 = vector.load %arg6[%c8, %c0_29] : memref<64x512xf32, #tpu.memory_space<vmem>>, vector<1x512xf32>
    tpu.vector_store %arg6[%c8, %c0_29], %36 {strides = array<i32>} : memref<64x512xf32, #tpu.memory_space<vmem>>, vector<1x512xf32>,
    %c1_30 = arith.constant 1 : index
    %c1_31 = arith.constant 1 : index
    %38 = memref.load %arg0[%c1_30, %c1_31] : memref<2x8xi32, #tpu.memory_space<smem>>
    %c0_i32_32 = arith.constant 0 : i32
    %c55_i32_33 = arith.constant 55 : i32
    %39 = arith.maxsi %c0_i32_32, %38 : i32
    %40 = arith.minsi %c55_i32_33, %39 : i32
    %c1_34 = arith.constant 1 : index
    %c6_35 = arith.constant 6 : index
    %41 = memref.load %arg0[%c1_34, %c6_35] : memref<2x8xi32, #tpu.memory_space<smem>>
    %c0_i32_36 = arith.constant 0 : i32
    %c55_i32_37 = arith.constant 55 : i32
    %42 = arith.maxsi %c0_i32_36, %41 : i32
    %43 = arith.minsi %c55_i32_37, %42 : i32
    %44 = arith.index_cast %40 : i32 to index
    %c0_38 = arith.constant 0 : index
    %45 = vector.load %arg1[%44, %c0_38] : memref<56x1024xf32, #tpu.memory_space<vmem>>, vector<1x512xf32>
    %46 = arith.index_cast %43 : i32 to index
    %c512_39 = arith.constant 512 : index
    %47 = vector.load %arg1[%46, %c512_39] : memref<56x1024xf32, #tpu.memory_space<vmem>>, vector<1x512xf32>
    %48 = arith.addf %45, %47 : vector<1x512xf32>
    %c9 = arith.constant 9 : index
    %c0_40 = arith.constant 0 : index
    %49 = vector.load %arg6[%c9, %c0_40] : memref<64x512xf32, #tpu.memory_space<vmem>>, vector<1x512xf32>
    tpu.vector_store %arg6[%c9, %c0_40], %48 {strides = array<i32>} : memref<64x512xf32, #tpu.memory_space<vmem>>, vector<1x512xf32>,
    %c0_41 = arith.constant 0 : index
    %c2 = arith.constant 2 : index
    %50 = memref.load %arg0[%c0_41, %c2] : memref<2x8xi32, #tpu.memory_space<smem>>
    %c0_i32_42 = arith.constant 0 : i32
    %c55_i32_43 = arith.constant 55 : i32
    %51 = arith.maxsi %c0_i32_42, %50 : i32
    %52 = arith.minsi %c55_i32_43, %51 : i32
    %c0_44 = arith.constant 0 : index
    %c5 = arith.constant 5 : index
    %53 = memref.load %arg0[%c0_44, %c5] : memref<2x8xi32, #tpu.memory_space<smem>>
    %c0_i32_45 = arith.constant 0 : i32
    %c55_i32_46 = arith.constant 55 : i32
    %54 = arith.maxsi %c0_i32_45, %53 : i32
    %55 = arith.minsi %c55_i32_46, %54 : i32
    %56 = arith.index_cast %52 : i32 to index
    %c0_47 = arith.constant 0 : index
    %57 = vector.load %arg1[%56, %c0_47] : memref<56x1024xf32, #tpu.memory_space<vmem>>, vector<1x512xf32>
    %58 = arith.index_cast %55 : i32 to index
    %c512_48 = arith.constant 512 : index
    %59 = vector.load %arg1[%58, %c512_48] : memref<56x1024xf32, #tpu.memory_space<vmem>>, vector<1x512xf32>
    %60 = arith.addf %57, %59 : vector<1x512xf32>
    %c16 = arith.constant 16 : index
    %c0_49 = arith.constant 0 : index
    %61 = vector.load %arg6[%c16, %c0_49] : memref<64x512xf32, #tpu.memory_space<vmem>>, vector<1x512xf32>
    tpu.vector_store %arg6[%c16, %c0_49], %60 {strides = array<i32>} : memref<64x512xf32, #tpu.memory_space<vmem>>, vector<1x512xf32>,
    %c1_50 = arith.constant 1 : index
    %c2_51 = arith.constant 2 : index
    %62 = memref.load %arg0[%c1_50, %c2_51] : memref<2x8xi32, #tpu.memory_space<smem>>
    %c0_i32_52 = arith.constant 0 : i32
    %c55_i32_53 = arith.constant 55 : i32
    %63 = arith.maxsi %c0_i32_52, %62 : i32
    %64 = arith.minsi %c55_i32_53, %63 : i32
    %c1_54 = arith.constant 1 : index
    %c5_55 = arith.constant 5 : index
    %65 = memref.load %arg0[%c1_54, %c5_55] : memref<2x8xi32, #tpu.memory_space<smem>>
    %c0_i32_56 = arith.constant 0 : i32
    %c55_i32_57 = arith.constant 55 : i32
    %66 = arith.maxsi %c0_i32_56, %65 : i32
    %67 = arith.minsi %c55_i32_57, %66 : i32
    %68 = arith.index_cast %64 : i32 to index
    %c0_58 = arith.constant 0 : index
    %69 = vector.load %arg1[%68, %c0_58] : memref<56x1024xf32, #tpu.memory_space<vmem>>, vector<1x512xf32>
    %70 = arith.index_cast %67 : i32 to index
    %c512_59 = arith.constant 512 : index
    %71 = vector.load %arg1[%70, %c512_59] : memref<56x1024xf32, #tpu.memory_space<vmem>>, vector<1x512xf32>
    %72 = arith.addf %69, %71 : vector<1x512xf32>
    %c17 = arith.constant 17 : index
    %c0_60 = arith.constant 0 : index
    %73 = vector.load %arg6[%c17, %c0_60] : memref<64x512xf32, #tpu.memory_space<vmem>>, vector<1x512xf32>
    tpu.vector_store %arg6[%c17, %c0_60], %72 {strides = array<i32>} : memref<64x512xf32, #tpu.memory_space<vmem>>, vector<1x512xf32>,
    %c0_61 = arith.constant 0 : index
    %c3 = arith.constant 3 : index
    %74 = memref.load %arg0[%c0_61, %c3] : memref<2x8xi32, #tpu.memory_space<smem>>
    %c0_i32_62 = arith.constant 0 : i32
    %c55_i32_63 = arith.constant 55 : i32
    %75 = arith.maxsi %c0_i32_62, %74 : i32
    %76 = arith.minsi %c55_i32_63, %75 : i32
    %c0_64 = arith.constant 0 : index
    %c4 = arith.constant 4 : index
    %77 = memref.load %arg0[%c0_64, %c4] : memref<2x8xi32, #tpu.memory_space<smem>>
    %c0_i32_65 = arith.constant 0 : i32
    %c55_i32_66 = arith.constant 55 : i32
    %78 = arith.maxsi %c0_i32_65, %77 : i32
    %79 = arith.minsi %c55_i32_66, %78 : i32
    %80 = arith.index_cast %76 : i32 to index
    %c0_67 = arith.constant 0 : index
    %81 = vector.load %arg1[%80, %c0_67] : memref<56x1024xf32, #tpu.memory_space<vmem>>, vector<1x512xf32>
    %82 = arith.index_cast %79 : i32 to index
    %c512_68 = arith.constant 512 : index
    %83 = vector.load %arg1[%82, %c512_68] : memref<56x1024xf32, #tpu.memory_space<vmem>>, vector<1x512xf32>
    %84 = arith.addf %81, %83 : vector<1x512xf32>
    %c24 = arith.constant 24 : index
    %c0_69 = arith.constant 0 : index
    %85 = vector.load %arg6[%c24, %c0_69] : memref<64x512xf32, #tpu.memory_space<vmem>>, vector<1x512xf32>
    tpu.vector_store %arg6[%c24, %c0_69], %84 {strides = array<i32>} : memref<64x512xf32, #tpu.memory_space<vmem>>, vector<1x512xf32>,
    %c1_70 = arith.constant 1 : index
    %c3_71 = arith.constant 3 : index
    %86 = memref.load %arg0[%c1_70, %c3_71] : memref<2x8xi32, #tpu.memory_space<smem>>
    %c0_i32_72 = arith.constant 0 : i32
    %c55_i32_73 = arith.constant 55 : i32
    %87 = arith.maxsi %c0_i32_72, %86 : i32
    %88 = arith.minsi %c55_i32_73, %87 : i32
    %c1_74 = arith.constant 1 : index
    %c4_75 = arith.constant 4 : index
    %89 = memref.load %arg0[%c1_74, %c4_75] : memref<2x8xi32, #tpu.memory_space<smem>>
    %c0_i32_76 = arith.constant 0 : i32
    %c55_i32_77 = arith.constant 55 : i32
    %90 = arith.maxsi %c0_i32_76, %89 : i32
    %91 = arith.minsi %c55_i32_77, %90 : i32
    %92 = arith.index_cast %88 : i32 to index
    %c0_78 = arith.constant 0 : index
    %93 = vector.load %arg1[%92, %c0_78] : memref<56x1024xf32, #tpu.memory_space<vmem>>, vector<1x512xf32>
    %94 = arith.index_cast %91 : i32 to index
    %c512_79 = arith.constant 512 : index
    %95 = vector.load %arg1[%94, %c512_79] : memref<56x1024xf32, #tpu.memory_space<vmem>>, vector<1x512xf32>
    %96 = arith.addf %93, %95 : vector<1x512xf32>
    %c25 = arith.constant 25 : index
    %c0_80 = arith.constant 0 : index
    %97 = vector.load %arg6[%c25, %c0_80] : memref<64x512xf32, #tpu.memory_space<vmem>>, vector<1x512xf32>
    tpu.vector_store %arg6[%c25, %c0_80], %96 {strides = array<i32>} : memref<64x512xf32, #tpu.memory_space<vmem>>, vector<1x512xf32>,
    %c0_81 = arith.constant 0 : index
    %c4_82 = arith.constant 4 : index
    %98 = memref.load %arg0[%c0_81, %c4_82] : memref<2x8xi32, #tpu.memory_space<smem>>
    %c0_i32_83 = arith.constant 0 : i32
    %c55_i32_84 = arith.constant 55 : i32
    %99 = arith.maxsi %c0_i32_83, %98 : i32
    %100 = arith.minsi %c55_i32_84, %99 : i32
    %c0_85 = arith.constant 0 : index
    %c3_86 = arith.constant 3 : index
    %101 = memref.load %arg0[%c0_85, %c3_86] : memref<2x8xi32, #tpu.memory_space<smem>>
    %c0_i32_87 = arith.constant 0 : i32
    %c55_i32_88 = arith.constant 55 : i32
    %102 = arith.maxsi %c0_i32_87, %101 : i32
    %103 = arith.minsi %c55_i32_88, %102 : i32
    %104 = arith.index_cast %100 : i32 to index
    %c0_89 = arith.constant 0 : index
    %105 = vector.load %arg1[%104, %c0_89] : memref<56x1024xf32, #tpu.memory_space<vmem>>, vector<1x512xf32>
    %106 = arith.index_cast %103 : i32 to index
    %c512_90 = arith.constant 512 : index
    %107 = vector.load %arg1[%106, %c512_90] : memref<56x1024xf32, #tpu.memory_space<vmem>>, vector<1x512xf32>
    %108 = arith.addf %105, %107 : vector<1x512xf32>
    %c32 = arith.constant 32 : index
    %c0_91 = arith.constant 0 : index
    %109 = vector.load %arg6[%c32, %c0_91] : memref<64x512xf32, #tpu.memory_space<vmem>>, vector<1x512xf32>
    tpu.vector_store %arg6[%c32, %c0_91], %108 {strides = array<i32>} : memref<64x512xf32, #tpu.memory_space<vmem>>, vector<1x512xf32>,
    %c1_92 = arith.constant 1 : index
    %c4_93 = arith.constant 4 : index
    %110 = memref.load %arg0[%c1_92, %c4_93] : memref<2x8xi32, #tpu.memory_space<smem>>
    %c0_i32_94 = arith.constant 0 : i32
    %c55_i32_95 = arith.constant 55 : i32
    %111 = arith.maxsi %c0_i32_94, %110 : i32
    %112 = arith.minsi %c55_i32_95, %111 : i32
    %c1_96 = arith.constant 1 : index
    %c3_97 = arith.constant 3 : index
    %113 = memref.load %arg0[%c1_96, %c3_97] : memref<2x8xi32, #tpu.memory_space<smem>>
    %c0_i32_98 = arith.constant 0 : i32
    %c55_i32_99 = arith.constant 55 : i32
    %114 = arith.maxsi %c0_i32_98, %113 : i32
    %115 = arith.minsi %c55_i32_99, %114 : i32
    %116 = arith.index_cast %112 : i32 to index
    %c0_100 = arith.constant 0 : index
    %117 = vector.load %arg1[%116, %c0_100] : memref<56x1024xf32, #tpu.memory_space<vmem>>, vector<1x512xf32>
    %118 = arith.index_cast %115 : i32 to index
    %c512_101 = arith.constant 512 : index
    %119 = vector.load %arg1[%118, %c512_101] : memref<56x1024xf32, #tpu.memory_space<vmem>>, vector<1x512xf32>
    %120 = arith.addf %117, %119 : vector<1x512xf32>
    %c33 = arith.constant 33 : index
    %c0_102 = arith.constant 0 : index
    %121 = vector.load %arg6[%c33, %c0_102] : memref<64x512xf32, #tpu.memory_space<vmem>>, vector<1x512xf32>
    tpu.vector_store %arg6[%c33, %c0_102], %120 {strides = array<i32>} : memref<64x512xf32, #tpu.memory_space<vmem>>, vector<1x512xf32>,
    %c0_103 = arith.constant 0 : index
    %c5_104 = arith.constant 5 : index
    %122 = memref.load %arg0[%c0_103, %c5_104] : memref<2x8xi32, #tpu.memory_space<smem>>
    %c0_i32_105 = arith.constant 0 : i32
    %c55_i32_106 = arith.constant 55 : i32
    %123 = arith.maxsi %c0_i32_105, %122 : i32
    %124 = arith.minsi %c55_i32_106, %123 : i32
    %c0_107 = arith.constant 0 : index
    %c2_108 = arith.constant 2 : index
    %125 = memref.load %arg0[%c0_107, %c2_108] : memref<2x8xi32, #tpu.memory_space<smem>>
    %c0_i32_109 = arith.constant 0 : i32
    %c55_i32_110 = arith.constant 55 : i32
    %126 = arith.maxsi %c0_i32_109, %125 : i32
    %127 = arith.minsi %c55_i32_110, %126 : i32
    %128 = arith.index_cast %124 : i32 to index
    %c0_111 = arith.constant 0 : index
    %129 = vector.load %arg1[%128, %c0_111] : memref<56x1024xf32, #tpu.memory_space<vmem>>, vector<1x512xf32>
    %130 = arith.index_cast %127 : i32 to index
    %c512_112 = arith.constant 512 : index
    %131 = vector.load %arg1[%130, %c512_112] : memref<56x1024xf32, #tpu.memory_space<vmem>>, vector<1x512xf32>
    %132 = arith.addf %129, %131 : vector<1x512xf32>
    %c40 = arith.constant 40 : index
    %c0_113 = arith.constant 0 : index
    %133 = vector.load %arg6[%c40, %c0_113] : memref<64x512xf32, #tpu.memory_space<vmem>>, vector<1x512xf32>
    tpu.vector_store %arg6[%c40, %c0_113], %132 {strides = array<i32>} : memref<64x512xf32, #tpu.memory_space<vmem>>, vector<1x512xf32>,
    %c1_114 = arith.constant 1 : index
    %c5_115 = arith.constant 5 : index
    %134 = memref.load %arg0[%c1_114, %c5_115] : memref<2x8xi32, #tpu.memory_space<smem>>
    %c0_i32_116 = arith.constant 0 : i32
    %c55_i32_117 = arith.constant 55 : i32
    %135 = arith.maxsi %c0_i32_116, %134 : i32
    %136 = arith.minsi %c55_i32_117, %135 : i32
    %c1_118 = arith.constant 1 : index
    %c2_119 = arith.constant 2 : index
    %137 = memref.load %arg0[%c1_118, %c2_119] : memref<2x8xi32, #tpu.memory_space<smem>>
    %c0_i32_120 = arith.constant 0 : i32
    %c55_i32_121 = arith.constant 55 : i32
    %138 = arith.maxsi %c0_i32_120, %137 : i32
    %139 = arith.minsi %c55_i32_121, %138 : i32
    %140 = arith.index_cast %136 : i32 to index
    %c0_122 = arith.constant 0 : index
    %141 = vector.load %arg1[%140, %c0_122] : memref<56x1024xf32, #tpu.memory_space<vmem>>, vector<1x512xf32>
    %142 = arith.index_cast %139 : i32 to index
    %c512_123 = arith.constant 512 : index
    %143 = vector.load %arg1[%142, %c512_123] : memref<56x1024xf32, #tpu.memory_space<vmem>>, vector<1x512xf32>
    %144 = arith.addf %141, %143 : vector<1x512xf32>
    %c41 = arith.constant 41 : index
    %c0_124 = arith.constant 0 : index
    %145 = vector.load %arg6[%c41, %c0_124] : memref<64x512xf32, #tpu.memory_space<vmem>>, vector<1x512xf32>
    tpu.vector_store %arg6[%c41, %c0_124], %144 {strides = array<i32>} : memref<64x512xf32, #tpu.memory_space<vmem>>, vector<1x512xf32>,
    %c0_125 = arith.constant 0 : index
    %c6_126 = arith.constant 6 : index
    %146 = memref.load %arg0[%c0_125, %c6_126] : memref<2x8xi32, #tpu.memory_space<smem>>
    %c0_i32_127 = arith.constant 0 : i32
    %c55_i32_128 = arith.constant 55 : i32
    %147 = arith.maxsi %c0_i32_127, %146 : i32
    %148 = arith.minsi %c55_i32_128, %147 : i32
    %c0_129 = arith.constant 0 : index
    %c1_130 = arith.constant 1 : index
    %149 = memref.load %arg0[%c0_129, %c1_130] : memref<2x8xi32, #tpu.memory_space<smem>>
    %c0_i32_131 = arith.constant 0 : i32
    %c55_i32_132 = arith.constant 55 : i32
    %150 = arith.maxsi %c0_i32_131, %149 : i32
    %151 = arith.minsi %c55_i32_132, %150 : i32
    %152 = arith.index_cast %148 : i32 to index
    %c0_133 = arith.constant 0 : index
    %153 = vector.load %arg1[%152, %c0_133] : memref<56x1024xf32, #tpu.memory_space<vmem>>, vector<1x512xf32>
    %154 = arith.index_cast %151 : i32 to index
    %c512_134 = arith.constant 512 : index
    %155 = vector.load %arg1[%154, %c512_134] : memref<56x1024xf32, #tpu.memory_space<vmem>>, vector<1x512xf32>
    %156 = arith.addf %153, %155 : vector<1x512xf32>
    %c48 = arith.constant 48 : index
    %c0_135 = arith.constant 0 : index
    %157 = vector.load %arg6[%c48, %c0_135] : memref<64x512xf32, #tpu.memory_space<vmem>>, vector<1x512xf32>
    tpu.vector_store %arg6[%c48, %c0_135], %156 {strides = array<i32>} : memref<64x512xf32, #tpu.memory_space<vmem>>, vector<1x512xf32>,
    %c1_136 = arith.constant 1 : index
    %c6_137 = arith.constant 6 : index
    %158 = memref.load %arg0[%c1_136, %c6_137] : memref<2x8xi32, #tpu.memory_space<smem>>
    %c0_i32_138 = arith.constant 0 : i32
    %c55_i32_139 = arith.constant 55 : i32
    %159 = arith.maxsi %c0_i32_138, %158 : i32
    %160 = arith.minsi %c55_i32_139, %159 : i32
    %c1_140 = arith.constant 1 : index
    %c1_141 = arith.constant 1 : index
    %161 = memref.load %arg0[%c1_140, %c1_141] : memref<2x8xi32, #tpu.memory_space<smem>>
    %c0_i32_142 = arith.constant 0 : i32
    %c55_i32_143 = arith.constant 55 : i32
    %162 = arith.maxsi %c0_i32_142, %161 : i32
    %163 = arith.minsi %c55_i32_143, %162 : i32
    %164 = arith.index_cast %160 : i32 to index
    %c0_144 = arith.constant 0 : index
    %165 = vector.load %arg1[%164, %c0_144] : memref<56x1024xf32, #tpu.memory_space<vmem>>, vector<1x512xf32>
    %166 = arith.index_cast %163 : i32 to index
    %c512_145 = arith.constant 512 : index
    %167 = vector.load %arg1[%166, %c512_145] : memref<56x1024xf32, #tpu.memory_space<vmem>>, vector<1x512xf32>
    %168 = arith.addf %165, %167 : vector<1x512xf32>
    %c49 = arith.constant 49 : index
    %c0_146 = arith.constant 0 : index
    %169 = vector.load %arg6[%c49, %c0_146] : memref<64x512xf32, #tpu.memory_space<vmem>>, vector<1x512xf32>
    tpu.vector_store %arg6[%c49, %c0_146], %168 {strides = array<i32>} : memref<64x512xf32, #tpu.memory_space<vmem>>, vector<1x512xf32>,
    %c0_147 = arith.constant 0 : index
    %c7_148 = arith.constant 7 : index
    %170 = memref.load %arg0[%c0_147, %c7_148] : memref<2x8xi32, #tpu.memory_space<smem>>
    %c0_i32_149 = arith.constant 0 : i32
    %c55_i32_150 = arith.constant 55 : i32
    %171 = arith.maxsi %c0_i32_149, %170 : i32
    %172 = arith.minsi %c55_i32_150, %171 : i32
    %c0_151 = arith.constant 0 : index
    %c0_152 = arith.constant 0 : index
    %173 = memref.load %arg0[%c0_151, %c0_152] : memref<2x8xi32, #tpu.memory_space<smem>>
    %c0_i32_153 = arith.constant 0 : i32
    %c55_i32_154 = arith.constant 55 : i32
    %174 = arith.maxsi %c0_i32_153, %173 : i32
    %175 = arith.minsi %c55_i32_154, %174 : i32
    %176 = arith.index_cast %172 : i32 to index
    %c0_155 = arith.constant 0 : index
    %177 = vector.load %arg1[%176, %c0_155] : memref<56x1024xf32, #tpu.memory_space<vmem>>, vector<1x512xf32>
    %178 = arith.index_cast %175 : i32 to index
    %c512_156 = arith.constant 512 : index
    %179 = vector.load %arg1[%178, %c512_156] : memref<56x1024xf32, #tpu.memory_space<vmem>>, vector<1x512xf32>
    %180 = arith.addf %177, %179 : vector<1x512xf32>
    %c56 = arith.constant 56 : index
    %c0_157 = arith.constant 0 : index
    %181 = vector.load %arg6[%c56, %c0_157] : memref<64x512xf32, #tpu.memory_space<vmem>>, vector<1x512xf32>
    tpu.vector_store %arg6[%c56, %c0_157], %180 {strides = array<i32>} : memref<64x512xf32, #tpu.memory_space<vmem>>, vector<1x512xf32>,
    %c1_158 = arith.constant 1 : index
    %c7_159 = arith.constant 7 : index
    %182 = memref.load %arg0[%c1_158, %c7_159] : memref<2x8xi32, #tpu.memory_space<smem>>
    %c0_i32_160 = arith.constant 0 : i32
    %c55_i32_161 = arith.constant 55 : i32
    %183 = arith.maxsi %c0_i32_160, %182 : i32
    %184 = arith.minsi %c55_i32_161, %183 : i32
    %c1_162 = arith.constant 1 : index
    %c0_163 = arith.constant 0 : index
    %185 = memref.load %arg0[%c1_162, %c0_163] : memref<2x8xi32, #tpu.memory_space<smem>>
    %c0_i32_164 = arith.constant 0 : i32
    %c55_i32_165 = arith.constant 55 : i32
    %186 = arith.maxsi %c0_i32_164, %185 : i32
    %187 = arith.minsi %c55_i32_165, %186 : i32
    %188 = arith.index_cast %184 : i32 to index
    %c0_166 = arith.constant 0 : index
    %189 = vector.load %arg1[%188, %c0_166] : memref<56x1024xf32, #tpu.memory_space<vmem>>, vector<1x512xf32>
    %190 = arith.index_cast %187 : i32 to index
    %c512_167 = arith.constant 512 : index
    %191 = vector.load %arg1[%190, %c512_167] : memref<56x1024xf32, #tpu.memory_space<vmem>>, vector<1x512xf32>
    %192 = arith.addf %189, %191 : vector<1x512xf32>
    %c57 = arith.constant 57 : index
    %c0_168 = arith.constant 0 : index
    %193 = vector.load %arg6[%c57, %c0_168] : memref<64x512xf32, #tpu.memory_space<vmem>>, vector<1x512xf32>
    tpu.vector_store %arg6[%c57, %c0_168], %192 {strides = array<i32>} : memref<64x512xf32, #tpu.memory_space<vmem>>, vector<1x512xf32>,
    %c0_169 = arith.constant 0 : index
    %c0_170 = arith.constant 0 : index
    %194 = vector.load %arg2[%c0_169, %c0_170] : memref<128x512xbf16, #tpu.memory_space<vmem>>, vector<128x512xbf16>
    %c0_171 = arith.constant 0 : index
    %c0_172 = arith.constant 0 : index
    %195 = vector.load %arg6[%c0_171, %c0_172] : memref<64x512xf32, #tpu.memory_space<vmem>>, vector<8x512xf32>
    %196 = vector.extract_strided_slice %195 {offsets = [0, 0], sizes = [8, 128], strides = [1, 1]} : vector<8x512xf32> to vector<8x128xf32>
    %197 = arith.negf %196 : vector<8x128xf32>
    %198 = math.exp %197 : vector<8x128xf32>
    %cst_173 = arith.constant 1.000000e+00 : f32
    %199 = vector.broadcast %cst_173 : f32 to vector<8x128xf32>
    %200 = arith.addf %199, %198 : vector<8x128xf32>
    %201 = arith.divf %199, %200 : vector<8x128xf32>
    %202 = vector.extract_strided_slice %195 {offsets = [0, 256], sizes = [8, 128], strides = [1, 1]} : vector<8x512xf32> to vector<8x128xf32>
    %203 = math.tanh %202 : vector<8x128xf32>
    %204 = vector.extract_strided_slice %195 {offsets = [0, 384], sizes = [8, 128], strides = [1, 1]} : vector<8x512xf32> to vector<8x128xf32>
    %205 = arith.negf %204 : vector<8x128xf32>
    %206 = math.exp %205 : vector<8x128xf32>
    %cst_174 = arith.constant 1.000000e+00 : f32
    %207 = vector.broadcast %cst_174 : f32 to vector<8x128xf32>
    %208 = arith.addf %207, %206 : vector<8x128xf32>
    %209 = arith.divf %207, %208 : vector<8x128xf32>
    %210 = arith.mulf %201, %203 : vector<8x128xf32>
    %211 = math.tanh %210 : vector<8x128xf32>
    %212 = arith.mulf %209, %211 : vector<8x128xf32>
    %c8_175 = arith.constant 8 : index
    %c0_176 = arith.constant 0 : index
    %213 = vector.load %arg6[%c8_175, %c0_176] : memref<64x512xf32, #tpu.memory_space<vmem>>, vector<8x512xf32>
    %214 = arith.truncf %212 : vector<8x128xf32> to vector<8x128xbf16>
    %cst_177 = arith.constant dense<0.000000e+00> : vector<8x512xf32>
    %215 = tpu.matmul %214, %194, %cst_177 {dimension_numbers = #tpu.dot_dimension_numbers<[1], [0], [0], [1], [0, 0, 1, 1], [], []>} : vector<8x128xbf16>, vector<128x512xbf16>, vector<8x512xf32> -> vector<8x512xf32>
    %216 = arith.addf %213, %215 : vector<8x512xf32>
    %217 = vector.extract_strided_slice %216 {offsets = [0, 0], sizes = [8, 128], strides = [1, 1]} : vector<8x512xf32> to vector<8x128xf32>
    %218 = arith.negf %217 : vector<8x128xf32>
    %219 = math.exp %218 : vector<8x128xf32>
    %cst_178 = arith.constant 1.000000e+00 : f32
    %220 = vector.broadcast %cst_178 : f32 to vector<8x128xf32>
    %221 = arith.addf %220, %219 : vector<8x128xf32>
    %222 = arith.divf %220, %221 : vector<8x128xf32>
    %223 = vector.extract_strided_slice %216 {offsets = [0, 256], sizes = [8, 128], strides = [1, 1]} : vector<8x512xf32> to vector<8x128xf32>
    %224 = math.tanh %223 : vector<8x128xf32>
    %225 = vector.extract_strided_slice %216 {offsets = [0, 384], sizes = [8, 128], strides = [1, 1]} : vector<8x512xf32> to vector<8x128xf32>
    %226 = arith.negf %225 : vector<8x128xf32>
    %227 = math.exp %226 : vector<8x128xf32>
    %cst_179 = arith.constant 1.000000e+00 : f32
    %228 = vector.broadcast %cst_179 : f32 to vector<8x128xf32>
    %229 = arith.addf %228, %227 : vector<8x128xf32>
    %230 = arith.divf %228, %229 : vector<8x128xf32>
    %231 = vector.extract_strided_slice %216 {offsets = [0, 128], sizes = [8, 128], strides = [1, 1]} : vector<8x512xf32> to vector<8x128xf32>
    %232 = arith.negf %231 : vector<8x128xf32>
    %233 = math.exp %232 : vector<8x128xf32>
    %cst_180 = arith.constant 1.000000e+00 : f32
    %234 = vector.broadcast %cst_180 : f32 to vector<8x128xf32>
    %235 = arith.addf %234, %233 : vector<8x128xf32>
    %236 = arith.divf %234, %235 : vector<8x128xf32>
    %237 = arith.mulf %236, %210 : vector<8x128xf32>
    %238 = arith.mulf %222, %224 : vector<8x128xf32>
    %239 = arith.addf %237, %238 : vector<8x128xf32>
    %240 = math.tanh %239 : vector<8x128xf32>
    %241 = arith.mulf %230, %240 : vector<8x128xf32>
    %c16_181 = arith.constant 16 : index
    %c0_182 = arith.constant 0 : index
    %242 = vector.load %arg6[%c16_181, %c0_182] : memref<64x512xf32, #tpu.memory_space<vmem>>, vector<8x512xf32>
    %243 = arith.truncf %241 : vector<8x128xf32> to vector<8x128xbf16>
    %cst_183 = arith.constant dense<0.000000e+00> : vector<8x512xf32>
    %244 = tpu.matmul %243, %194, %cst_183 {dimension_numbers = #tpu.dot_dimension_numbers<[1], [0], [0], [1], [0, 0, 1, 1], [], []>} : vector<8x128xbf16>, vector<128x512xbf16>, vector<8x512xf32> -> vector<8x512xf32>
    %245 = arith.addf %242, %244 : vector<8x512xf32>
    %246 = vector.extract_strided_slice %245 {offsets = [0, 0], sizes = [8, 128], strides = [1, 1]} : vector<8x512xf32> to vector<8x128xf32>
    %247 = arith.negf %246 : vector<8x128xf32>
    %248 = math.exp %247 : vector<8x128xf32>
    %cst_184 = arith.constant 1.000000e+00 : f32
    %249 = vector.broadcast %cst_184 : f32 to vector<8x128xf32>
    %250 = arith.addf %249, %248 : vector<8x128xf32>
    %251 = arith.divf %249, %250 : vector<8x128xf32>
    %252 = vector.extract_strided_slice %245 {offsets = [0, 256], sizes = [8, 128], strides = [1, 1]} : vector<8x512xf32> to vector<8x128xf32>
    %253 = math.tanh %252 : vector<8x128xf32>
    %254 = vector.extract_strided_slice %245 {offsets = [0, 384], sizes = [8, 128], strides = [1, 1]} : vector<8x512xf32> to vector<8x128xf32>
    %255 = arith.negf %254 : vector<8x128xf32>
    %256 = math.exp %255 : vector<8x128xf32>
    %cst_185 = arith.constant 1.000000e+00 : f32
    %257 = vector.broadcast %cst_185 : f32 to vector<8x128xf32>
    %258 = arith.addf %257, %256 : vector<8x128xf32>
    %259 = arith.divf %257, %258 : vector<8x128xf32>
    %260 = vector.extract_strided_slice %245 {offsets = [0, 128], sizes = [8, 128], strides = [1, 1]} : vector<8x512xf32> to vector<8x128xf32>
    %261 = arith.negf %260 : vector<8x128xf32>
    %262 = math.exp %261 : vector<8x128xf32>
    %cst_186 = arith.constant 1.000000e+00 : f32
    %263 = vector.broadcast %cst_186 : f32 to vector<8x128xf32>
    %264 = arith.addf %263, %262 : vector<8x128xf32>
    %265 = arith.divf %263, %264 : vector<8x128xf32>
    %266 = arith.mulf %265, %239 : vector<8x128xf32>
    %267 = arith.mulf %251, %253 : vector<8x128xf32>
    %268 = arith.addf %266, %267 : vector<8x128xf32>
    %269 = math.tanh %268 : vector<8x128xf32>
    %270 = arith.mulf %259, %269 : vector<8x128xf32>
    %c24_187 = arith.constant 24 : index
    %c0_188 = arith.constant 0 : index
    %271 = vector.load %arg6[%c24_187, %c0_188] : memref<64x512xf32, #tpu.memory_space<vmem>>, vector<8x512xf32>
    %272 = arith.truncf %270 : vector<8x128xf32> to vector<8x128xbf16>
    %cst_189 = arith.constant dense<0.000000e+00> : vector<8x512xf32>
    %273 = tpu.matmul %272, %194, %cst_189 {dimension_numbers = #tpu.dot_dimension_numbers<[1], [0], [0], [1], [0, 0, 1, 1], [], []>} : vector<8x128xbf16>, vector<128x512xbf16>, vector<8x512xf32> -> vector<8x512xf32>
    %274 = arith.addf %271, %273 : vector<8x512xf32>
    %275 = vector.extract_strided_slice %274 {offsets = [0, 0], sizes = [8, 128], strides = [1, 1]} : vector<8x512xf32> to vector<8x128xf32>
    %276 = arith.negf %275 : vector<8x128xf32>
    %277 = math.exp %276 : vector<8x128xf32>
    %cst_190 = arith.constant 1.000000e+00 : f32
    %278 = vector.broadcast %cst_190 : f32 to vector<8x128xf32>
    %279 = arith.addf %278, %277 : vector<8x128xf32>
    %280 = arith.divf %278, %279 : vector<8x128xf32>
    %281 = vector.extract_strided_slice %274 {offsets = [0, 256], sizes = [8, 128], strides = [1, 1]} : vector<8x512xf32> to vector<8x128xf32>
    %282 = math.tanh %281 : vector<8x128xf32>
    %283 = vector.extract_strided_slice %274 {offsets = [0, 384], sizes = [8, 128], strides = [1, 1]} : vector<8x512xf32> to vector<8x128xf32>
    %284 = arith.negf %283 : vector<8x128xf32>
    %285 = math.exp %284 : vector<8x128xf32>
    %cst_191 = arith.constant 1.000000e+00 : f32
    %286 = vector.broadcast %cst_191 : f32 to vector<8x128xf32>
    %287 = arith.addf %286, %285 : vector<8x128xf32>
    %288 = arith.divf %286, %287 : vector<8x128xf32>
    %289 = vector.extract_strided_slice %274 {offsets = [0, 128], sizes = [8, 128], strides = [1, 1]} : vector<8x512xf32> to vector<8x128xf32>
    %290 = arith.negf %289 : vector<8x128xf32>
    %291 = math.exp %290 : vector<8x128xf32>
    %cst_192 = arith.constant 1.000000e+00 : f32
    %292 = vector.broadcast %cst_192 : f32 to vector<8x128xf32>
    %293 = arith.addf %292, %291 : vector<8x128xf32>
    %294 = arith.divf %292, %293 : vector<8x128xf32>
    %295 = arith.mulf %294, %268 : vector<8x128xf32>
    %296 = arith.mulf %280, %282 : vector<8x128xf32>
    %297 = arith.addf %295, %296 : vector<8x128xf32>
    %298 = math.tanh %297 : vector<8x128xf32>
    %299 = arith.mulf %288, %298 : vector<8x128xf32>
    %c32_193 = arith.constant 32 : index
    %c0_194 = arith.constant 0 : index
    %300 = vector.load %arg6[%c32_193, %c0_194] : memref<64x512xf32, #tpu.memory_space<vmem>>, vector<8x512xf32>
    %301 = arith.truncf %299 : vector<8x128xf32> to vector<8x128xbf16>
    %cst_195 = arith.constant dense<0.000000e+00> : vector<8x512xf32>
    %302 = tpu.matmul %301, %194, %cst_195 {dimension_numbers = #tpu.dot_dimension_numbers<[1], [0], [0], [1], [0, 0, 1, 1], [], []>} : vector<8x128xbf16>, vector<128x512xbf16>, vector<8x512xf32> -> vector<8x512xf32>
    %303 = arith.addf %300, %302 : vector<8x512xf32>
    %304 = vector.extract_strided_slice %303 {offsets = [0, 0], sizes = [8, 128], strides = [1, 1]} : vector<8x512xf32> to vector<8x128xf32>
    %305 = arith.negf %304 : vector<8x128xf32>
    %306 = math.exp %305 : vector<8x128xf32>
    %cst_196 = arith.constant 1.000000e+00 : f32
    %307 = vector.broadcast %cst_196 : f32 to vector<8x128xf32>
    %308 = arith.addf %307, %306 : vector<8x128xf32>
    %309 = arith.divf %307, %308 : vector<8x128xf32>
    %310 = vector.extract_strided_slice %303 {offsets = [0, 256], sizes = [8, 128], strides = [1, 1]} : vector<8x512xf32> to vector<8x128xf32>
    %311 = math.tanh %310 : vector<8x128xf32>
    %312 = vector.extract_strided_slice %303 {offsets = [0, 384], sizes = [8, 128], strides = [1, 1]} : vector<8x512xf32> to vector<8x128xf32>
    %313 = arith.negf %312 : vector<8x128xf32>
    %314 = math.exp %313 : vector<8x128xf32>
    %cst_197 = arith.constant 1.000000e+00 : f32
    %315 = vector.broadcast %cst_197 : f32 to vector<8x128xf32>
    %316 = arith.addf %315, %314 : vector<8x128xf32>
    %317 = arith.divf %315, %316 : vector<8x128xf32>
    %318 = vector.extract_strided_slice %303 {offsets = [0, 128], sizes = [8, 128], strides = [1, 1]} : vector<8x512xf32> to vector<8x128xf32>
    %319 = arith.negf %318 : vector<8x128xf32>
    %320 = math.exp %319 : vector<8x128xf32>
    %cst_198 = arith.constant 1.000000e+00 : f32
    %321 = vector.broadcast %cst_198 : f32 to vector<8x128xf32>
    %322 = arith.addf %321, %320 : vector<8x128xf32>
    %323 = arith.divf %321, %322 : vector<8x128xf32>
    %324 = arith.mulf %323, %297 : vector<8x128xf32>
    %325 = arith.mulf %309, %311 : vector<8x128xf32>
    %326 = arith.addf %324, %325 : vector<8x128xf32>
    %327 = math.tanh %326 : vector<8x128xf32>
    %328 = arith.mulf %317, %327 : vector<8x128xf32>
    %c40_199 = arith.constant 40 : index
    %c0_200 = arith.constant 0 : index
    %329 = vector.load %arg6[%c40_199, %c0_200] : memref<64x512xf32, #tpu.memory_space<vmem>>, vector<8x512xf32>
    %330 = arith.truncf %328 : vector<8x128xf32> to vector<8x128xbf16>
    %cst_201 = arith.constant dense<0.000000e+00> : vector<8x512xf32>
    %331 = tpu.matmul %330, %194, %cst_201 {dimension_numbers = #tpu.dot_dimension_numbers<[1], [0], [0], [1], [0, 0, 1, 1], [], []>} : vector<8x128xbf16>, vector<128x512xbf16>, vector<8x512xf32> -> vector<8x512xf32>
    %332 = arith.addf %329, %331 : vector<8x512xf32>
    %333 = vector.extract_strided_slice %332 {offsets = [0, 0], sizes = [8, 128], strides = [1, 1]} : vector<8x512xf32> to vector<8x128xf32>
    %334 = arith.negf %333 : vector<8x128xf32>
    %335 = math.exp %334 : vector<8x128xf32>
    %cst_202 = arith.constant 1.000000e+00 : f32
    %336 = vector.broadcast %cst_202 : f32 to vector<8x128xf32>
    %337 = arith.addf %336, %335 : vector<8x128xf32>
    %338 = arith.divf %336, %337 : vector<8x128xf32>
    %339 = vector.extract_strided_slice %332 {offsets = [0, 256], sizes = [8, 128], strides = [1, 1]} : vector<8x512xf32> to vector<8x128xf32>
    %340 = math.tanh %339 : vector<8x128xf32>
    %341 = vector.extract_strided_slice %332 {offsets = [0, 384], sizes = [8, 128], strides = [1, 1]} : vector<8x512xf32> to vector<8x128xf32>
    %342 = arith.negf %341 : vector<8x128xf32>
    %343 = math.exp %342 : vector<8x128xf32>
    %cst_203 = arith.constant 1.000000e+00 : f32
    %344 = vector.broadcast %cst_203 : f32 to vector<8x128xf32>
    %345 = arith.addf %344, %343 : vector<8x128xf32>
    %346 = arith.divf %344, %345 : vector<8x128xf32>
    %347 = vector.extract_strided_slice %332 {offsets = [0, 128], sizes = [8, 128], strides = [1, 1]} : vector<8x512xf32> to vector<8x128xf32>
    %348 = arith.negf %347 : vector<8x128xf32>
    %349 = math.exp %348 : vector<8x128xf32>
    %cst_204 = arith.constant 1.000000e+00 : f32
    %350 = vector.broadcast %cst_204 : f32 to vector<8x128xf32>
    %351 = arith.addf %350, %349 : vector<8x128xf32>
    %352 = arith.divf %350, %351 : vector<8x128xf32>
    %353 = arith.mulf %352, %326 : vector<8x128xf32>
    %354 = arith.mulf %338, %340 : vector<8x128xf32>
    %355 = arith.addf %353, %354 : vector<8x128xf32>
    %356 = math.tanh %355 : vector<8x128xf32>
    %357 = arith.mulf %346, %356 : vector<8x128xf32>
    %c48_205 = arith.constant 48 : index
    %c0_206 = arith.constant 0 : index
    %358 = vector.load %arg6[%c48_205, %c0_206] : memref<64x512xf32, #tpu.memory_space<vmem>>, vector<8x512xf32>
    %359 = arith.truncf %357 : vector<8x128xf32> to vector<8x128xbf16>
    %cst_207 = arith.constant dense<0.000000e+00> : vector<8x512xf32>
    %360 = tpu.matmul %359, %194, %cst_207 {dimension_numbers = #tpu.dot_dimension_numbers<[1], [0], [0], [1], [0, 0, 1, 1], [], []>} : vector<8x128xbf16>, vector<128x512xbf16>, vector<8x512xf32> -> vector<8x512xf32>
    %361 = arith.addf %358, %360 : vector<8x512xf32>
    %362 = vector.extract_strided_slice %361 {offsets = [0, 0], sizes = [8, 128], strides = [1, 1]} : vector<8x512xf32> to vector<8x128xf32>
    %363 = arith.negf %362 : vector<8x128xf32>
    %364 = math.exp %363 : vector<8x128xf32>
    %cst_208 = arith.constant 1.000000e+00 : f32
    %365 = vector.broadcast %cst_208 : f32 to vector<8x128xf32>
    %366 = arith.addf %365, %364 : vector<8x128xf32>
    %367 = arith.divf %365, %366 : vector<8x128xf32>
    %368 = vector.extract_strided_slice %361 {offsets = [0, 256], sizes = [8, 128], strides = [1, 1]} : vector<8x512xf32> to vector<8x128xf32>
    %369 = math.tanh %368 : vector<8x128xf32>
    %370 = vector.extract_strided_slice %361 {offsets = [0, 384], sizes = [8, 128], strides = [1, 1]} : vector<8x512xf32> to vector<8x128xf32>
    %371 = arith.negf %370 : vector<8x128xf32>
    %372 = math.exp %371 : vector<8x128xf32>
    %cst_209 = arith.constant 1.000000e+00 : f32
    %373 = vector.broadcast %cst_209 : f32 to vector<8x128xf32>
    %374 = arith.addf %373, %372 : vector<8x128xf32>
    %375 = arith.divf %373, %374 : vector<8x128xf32>
    %376 = vector.extract_strided_slice %361 {offsets = [0, 128], sizes = [8, 128], strides = [1, 1]} : vector<8x512xf32> to vector<8x128xf32>
    %377 = arith.negf %376 : vector<8x128xf32>
    %378 = math.exp %377 : vector<8x128xf32>
    %cst_210 = arith.constant 1.000000e+00 : f32
    %379 = vector.broadcast %cst_210 : f32 to vector<8x128xf32>
    %380 = arith.addf %379, %378 : vector<8x128xf32>
    %381 = arith.divf %379, %380 : vector<8x128xf32>
    %382 = arith.mulf %381, %355 : vector<8x128xf32>
    %383 = arith.mulf %367, %369 : vector<8x128xf32>
    %384 = arith.addf %382, %383 : vector<8x128xf32>
    %385 = math.tanh %384 : vector<8x128xf32>
    %386 = arith.mulf %375, %385 : vector<8x128xf32>
    %c56_211 = arith.constant 56 : index
    %c0_212 = arith.constant 0 : index
    %387 = vector.load %arg6[%c56_211, %c0_212] : memref<64x512xf32, #tpu.memory_space<vmem>>, vector<8x512xf32>
    %388 = arith.truncf %386 : vector<8x128xf32> to vector<8x128xbf16>
    %cst_213 = arith.constant dense<0.000000e+00> : vector<8x512xf32>
    %389 = tpu.matmul %388, %194, %cst_213 {dimension_numbers = #tpu.dot_dimension_numbers<[1], [0], [0], [1], [0, 0, 1, 1], [], []>} : vector<8x128xbf16>, vector<128x512xbf16>, vector<8x512xf32> -> vector<8x512xf32>
    %390 = arith.addf %387, %389 : vector<8x512xf32>
    %391 = vector.extract_strided_slice %390 {offsets = [0, 0], sizes = [8, 128], strides = [1, 1]} : vector<8x512xf32> to vector<8x128xf32>
    %392 = arith.negf %391 : vector<8x128xf32>
    %393 = math.exp %392 : vector<8x128xf32>
    %cst_214 = arith.constant 1.000000e+00 : f32
    %394 = vector.broadcast %cst_214 : f32 to vector<8x128xf32>
    %395 = arith.addf %394, %393 : vector<8x128xf32>
    %396 = arith.divf %394, %395 : vector<8x128xf32>
    %397 = vector.extract_strided_slice %390 {offsets = [0, 256], sizes = [8, 128], strides = [1, 1]} : vector<8x512xf32> to vector<8x128xf32>
    %398 = math.tanh %397 : vector<8x128xf32>
    %399 = vector.extract_strided_slice %390 {offsets = [0, 384], sizes = [8, 128], strides = [1, 1]} : vector<8x512xf32> to vector<8x128xf32>
    %400 = arith.negf %399 : vector<8x128xf32>
    %401 = math.exp %400 : vector<8x128xf32>
    %cst_215 = arith.constant 1.000000e+00 : f32
    %402 = vector.broadcast %cst_215 : f32 to vector<8x128xf32>
    %403 = arith.addf %402, %401 : vector<8x128xf32>
    %404 = arith.divf %402, %403 : vector<8x128xf32>
    %405 = vector.extract_strided_slice %390 {offsets = [0, 128], sizes = [8, 128], strides = [1, 1]} : vector<8x512xf32> to vector<8x128xf32>
    %406 = arith.negf %405 : vector<8x128xf32>
    %407 = math.exp %406 : vector<8x128xf32>
    %cst_216 = arith.constant 1.000000e+00 : f32
    %408 = vector.broadcast %cst_216 : f32 to vector<8x128xf32>
    %409 = arith.addf %408, %407 : vector<8x128xf32>
    %410 = arith.divf %408, %409 : vector<8x128xf32>
    %411 = arith.mulf %410, %384 : vector<8x128xf32>
    %412 = arith.mulf %396, %398 : vector<8x128xf32>
    %413 = arith.addf %411, %412 : vector<8x128xf32>
    %414 = math.tanh %413 : vector<8x128xf32>
    %415 = arith.mulf %404, %414 : vector<8x128xf32>
    %c0_217 = arith.constant 0 : index
    %c0_218 = arith.constant 0 : index
    %416 = vector.load %arg3[%c0_217, %c0_218] : memref<128x128xf32, #tpu.memory_space<vmem>>, vector<128x128xf32>
    %cst_219 = arith.constant dense<0.000000e+00> : vector<8x128xf32>
    %417 = tpu.matmul %415, %416, %cst_219 {dimension_numbers = #tpu.dot_dimension_numbers<[1], [0], [0], [1], [0, 0, 1, 1], [], []>} : vector<8x128xf32>, vector<128x128xf32>, vector<8x128xf32> -> vector<8x128xf32>
    %c0_220 = arith.constant 0 : index
    %c0_221 = arith.constant 0 : index
    %418 = vector.load %arg4[%c0_220, %c0_221] : memref<1x128xf32, #tpu.memory_space<vmem>>, vector<1x128xf32>
    %419 = vector.broadcast %418 : vector<1x128xf32> to vector<8x128xf32>
    %420 = arith.addf %417, %419 : vector<8x128xf32>
    %c0_222 = arith.constant 0 : index
    %c0_223 = arith.constant 0 : index
    %421 = vector.load %arg5[%c0_222, %c0_223] : memref<8x128xf32, #tpu.memory_space<vmem>>, vector<8x128xf32>
    tpu.vector_store %arg5[%c0_222, %c0_223], %420 {strides = array<i32>} : memref<8x128xf32, #tpu.memory_space<vmem>>, vector<8x128xf32>,
    return
  }
}

</mosaic_0001>

<bundles_post_ra>
// kernel: email_classifier_forward.1
= control target key start
LH: loop header
LB: loop body
LE: loop exit
PB: predicated region body
PF: predicated region fallthrough
CT: control target
= control target key end

     0   :  { %10 = vsyncpa [#allocation5], 0  ;;  %s3277_s0 = inlined_call_operand.hbm [shape: s32[2,8], index: 0, kind: input, shape index: {}]   ;;  %s3278_s1 = inlined_call_operand.hbm [shape: f32[56,1024], index: 1, kind: input, shape index: {}]   ;;  %s3279_s2 = inlined_call_operand.hbm [shape: bf16[128,512], index: 2, kind: input, shape index: {}]   ;;  %s3280_s3 = inlined_call_operand.hbm [shape: f32[128,128], index: 3, kind: input, shape index: {}]   ;;  %s3281_s4 = inlined_call_operand.vmem [shape: f32[1,128], index: 4, kind: input, shape index: {}]   ;;  %s3282_s5 = inlined_call_operand.vmem [shape: f32[8,128], index: 5, kind: output, shape index: {}]  }
   0x1   :  { %11 = vsyncpa [#allocation4], 0 }
   0x2   :  { %12 = vsyncpa [#allocation8], 0  ;;  %s2647_s18 = smov [#allocation7]  }
   0x3   :  { %s38_s19 = sshll.u32 %s2647_s18, 4  ;;  %s39_s19 = int_to_ptr.vmem [resolvable:$true] %s38_s19 }
   0x4   :  { %s2581_s20 = scalar_lea.vmem %s39_s19, 4096  ;;  %p2586_p1 = scmp.lt.s32.totalorder %s39_s19, %s39_s19 }
   0x5   :  { %p2582_p0 = scmp.ne.s32.totalorder %s39_s19, %s2581_s20  ;;  %p2587_p2 = scmp.lt.s32.totalorder %s2581_s20, %s2581_s20 }
   0x7   :  { %p2588_p3 = por %p2587_p2, %p2586_p1 }
   0x9   :  { %p2589_p4 = pnand %p2588_p3, %p2582_p0 }
   0xb   :  { %2592 = shalt.err (!%p2589_p4)
}
   0xc   :  { %s2648_s21 = smov 256   ;;  %s2649_s22 = smov 16  }
   0xd   :  { %44 = dma.hbm_to_vmem [thread:$0]  %s3279_s2, 4096, %s39_s19, [#allocation8], %s2648_s21, %s2648_s21, %s2649_s22  }
   0xe   :  { %s2650_s25 = smov [#allocation3]   ;;  %s2651_s28 = smov [#allocation6]  }
   0xf   :  { %20 = dma.hbm_to_smem %s3277_s0, 32, %s2650_s25, [#allocation5]  }
  0x10   :  { %s26_s29 = sshll.u32 %s2651_s28, 4  ;;  %s27_s29 = int_to_ptr.vmem [resolvable:$true] %s26_s29 }
  0x11   :  { %s2609_s30 = scalar_lea.vmem %s27_s29, 7168  ;;  %p2614_p6 = scmp.lt.s32.totalorder %s27_s29, %s27_s29 }
  0x12   :  { %p2610_p5 = scmp.ne.s32.totalorder %s27_s29, %s2609_s30  ;;  %p2615_p7 = scmp.lt.s32.totalorder %s2609_s30, %s2609_s30 }
  0x14   :  { %p2616_p8 = por %p2615_p7, %p2614_p6 }
  0x16   :  { %p2617_p9 = pnand %p2616_p8, %p2610_p5 }
  0x18   :  { %2620 = shalt.err (!%p2617_p9)
}
  0x19   :  { %s2652_s6 = smov 1024   ;;  %s2653_s7 = smov 64  }
  0x1a   :  { %32 = dma.hbm_to_vmem [thread:$0]  %s3278_s1, 7168, %s27_s29, [#allocation4], %s2652_s6, %s2652_s6, %s2653_s7  }
  0x1b   :  { %s2654_s2 = smov [#allocation9]  }
  0x1c   :  { %s50_s10 = sshll.u32 %s2654_s2, 4  ;;  %s51_s10 = int_to_ptr.vmem [resolvable:$true] %s50_s10 }
  0x1d   :  { %s2629_s0 = scalar_lea.vmem %s51_s10, 2048  ;;  %p2634_p11 = scmp.lt.s32.totalorder %s51_s10, %s51_s10 }
  0x1e   :  { %p2630_p10 = scmp.ne.s32.totalorder %s51_s10, %s2629_s0  ;;  %p2635_p12 = scmp.lt.s32.totalorder %s2629_s0, %s2629_s0 }
  0x20   :  { %p2636_p13 = por %p2635_p12, %p2634_p11 }
  0x22   :  { %p2637_p0 = pnand %p2636_p13, %p2630_p10 }
  0x24   :  { %2640 = shalt.err (!%p2637_p0)
}
  0x25   :  { %s2655_s11 = smov 128   ;;  %s2656_s12 = smov 8  }
  0x26   :  { %56 = dma.hbm_to_vmem [thread:$0]  %s3280_s3, 2048, %s51_s10, [#allocation8], %s2655_s11, %s2655_s11, %s2656_s12  }
  0x27   :  { %2641 = dma.done.wait [#allocation5], 32  }
  0x28   :  { %2642 = vsyncadd [#allocation5], 4294967264 }
  0x29   :  { %2643 = dma.done.wait [#allocation4], 7168  }
  0x2a   :  { %2644 = vsyncadd [#allocation4], 4294960128 }
  0x2b   :  { %2645 = dma.done.wait [#allocation8], 6144  }
  0x2c   :  { %2646 = vsyncadd [#allocation8], 4294961152 }
  0x2d   :  { %71 = sfence }
  0x2e   :  { %v2702_v0 = vld [vmem:[#allocation7 + $0xe4] ss:$16 sps:$4 sm:$0xff]   ;;  %v2704_v1 = vld [vmem:[#allocation7 + $0xe0] ss:$16 sps:$4 sm:$0xff]   ;;  %v2657_v2 = vmov 0   ;;  %v2658_v3 = vmov 0.0   ;;  %v135_v23 = vlaneseq }
  0x2f   :  { %884 = vmatprep.mubr.bf16.mxu0 %v2657_v2  ;;  %73 = vst [vmem:[#allocation2] sm:$0xff] %v2658_v3  ;;  %75 = vst [vmem:[#allocation2 + $0x10] sm:$0xff] %v2658_v3  ;;  %s2707_s1 = sld [smem:[#allocation3]]  ;;  %925 = vmatprep.mubr.bf16.mxu1 %v2657_v2  ;;  %v2711_v4 = vld [vmem:[#allocation7 + $0xc4] ss:$16 sps:$4 sm:$0xff]   ;;  %vm2659_vm1 = vmmov 0  }
  0x30   :  { %76 = vst [vmem:[#allocation2 + $0x18] sm:$0xff] %v2658_v3  ;;  %77 = vst [vmem:[#allocation2 + $0x20] sm:$0xff] %v2658_v3  ;;  %852 = vmatprep.subr.bf16.mxu0 %v2702_v0  ;;  %v2714_v5 = vld [vmem:[#allocation7 + $0xc0] ss:$16 sps:$4 sm:$0xff]   ;;  %v2717_v6 = vld [vmem:[#allocation7 + $0xa4] ss:$16 sps:$4 sm:$0xff]  }
  0x31   :  { %78 = vst [vmem:[#allocation2 + $0x28] sm:$0xff] %v2658_v3  ;;  %79 = vst [vmem:[#allocation2 + $0x30] sm:$0xff] %v2658_v3  ;;  %853 = vmatpush1.bf16.msra.mxu0 %v2704_v1  ;;  %s2719_s3 = sld [smem:[#allocation3 + $0x7]]  ;;  %v2721_v7 = vld [vmem:[#allocation7 + $0xec] ss:$16 sps:$4 sm:$0xff]   ;;  %vm2788_vm0 = vcmp.lt.s32.totalorder %v135_v23, 512 }
  0x32   :  { %80 = vst [vmem:[#allocation2 + $0x38] sm:$0xff] %v2658_v3  ;;  %81 = vst [vmem:[#allocation2 + $0x40] sm:$0xff] %v2658_v3  ;;  %854 = vmatprep.subr.bf16.mxu0 %v2711_v4  ;;  %v2723_v8 = vld [vmem:[#allocation7 + $0xa0] ss:$16 sps:$4 sm:$0xff]   ;;  %v2725_v9 = vld [vmem:[#allocation7 + $0xe8] ss:$16 sps:$4 sm:$0xff]   ;;  %893 = vmatprep.subr.bf16.mxu1 %v2721_v7 }
  0x33   :  { %82 = vst [vmem:[#allocation2 + $0x48] sm:$0xff] %v2658_v3  ;;  %83 = vst [vmem:[#allocation2 + $0x50] sm:$0xff] %v2658_v3  ;;  %v2728_v10 = vld [vmem:[#allocation7 + $0x84] ss:$16 sps:$4 sm:$0xff]   ;;  %894 = vmatpush1.bf16.msra.mxu1 %v2725_v9  ;;  %v2734_v11 = vld [vmem:[#allocation7 + $0xcc] ss:$16 sps:$4 sm:$0xff]  }
  0x34   :  { %84 = vst [vmem:[#allocation2 + $0x58] sm:$0xff] %v2658_v3  ;;  %85 = vst [vmem:[#allocation2 + $0x60] sm:$0xff] %v2658_v3  ;;  %s2737_s15 = sld [smem:[#allocation3 + $0x80]]  ;;  %v2739_v12 = vld [vmem:[#allocation7 + $0xc8] ss:$16 sps:$4 sm:$0xff]   ;;  %895 = vmatprep.subr.bf16.mxu1 %v2734_v11 }
  0x35   :  { %86 = vst [vmem:[#allocation2 + $0x68] sm:$0xff] %v2658_v3  ;;  %87 = vst [vmem:[#allocation2 + $0x70] sm:$0xff] %v2658_v3  ;;  %855 = vmatpush1.bf16.msra.mxu0 %v2714_v5  ;;  %p106_p1 = scmp.gt.s32.totalorder %s2707_s1, 0  ;;  %p1881_p2 = scmp.lt.s32.totalorder %s2707_s1, 55  ;;  %v2742_v13 = vld [vmem:[#allocation7 + $0x80] ss:$16 sps:$4 sm:$0xff]  }
  0x36   :  { %88 = vst [vmem:[#allocation2 + $0x78] sm:$0xff] %v2658_v3  ;;  %89 = vst [vmem:[#allocation2 + $0x80] sm:$0xff] %v2658_v3  ;;  %856 = vmatprep.subr.bf16.mxu0 %v2717_v6  ;;  %v2747_v14 = vld [vmem:[#allocation7 + $0x64] ss:$16 sps:$4 sm:$0xff]   ;;  %v2749_v15 = vld [vmem:[#allocation7 + $0xac] ss:$16 sps:$4 sm:$0xff]  }
  0x37   :  { %90 = vst [vmem:[#allocation2 + $0x88] sm:$0xff] %v2658_v3  ;;  %91 = vst [vmem:[#allocation2 + $0x90] sm:$0xff] %v2658_v3  ;;  %s107_s16 = scalar_select %p106_p1, %s2707_s1, 0  ;;  %896 = vmatpush1.bf16.msra.mxu1 %v2739_v12  ;;  %v2754_v16 = vld [vmem:[#allocation7 + $0xa8] ss:$16 sps:$4 sm:$0xff]  }
  0x38   :  { %92 = vst [vmem:[#allocation2 + $0x98] sm:$0xff] %v2658_v3  ;;  %93 = vst [vmem:[#allocation2 + $0xa0] sm:$0xff] %v2658_v3  ;;  %p111_p3 = scmp.gt.s32.totalorder %s2719_s3, 0  ;;  %p1887_p4 = scmp.lt.s32.totalorder %s2719_s3, 55  ;;  %897 = vmatprep.subr.bf16.mxu1 %v2749_v15  ;;  %v2759_v17 = vld [vmem:[#allocation7 + $0x8c] ss:$16 sps:$4 sm:$0xff]  }
  0x39   :  { %94 = vst [vmem:[#allocation2 + $0xa8] sm:$0xff] %v2658_v3  ;;  %95 = vst [vmem:[#allocation2 + $0xb0] sm:$0xff] %v2658_v3  ;;  %857 = vmatpush1.bf16.msra.mxu0 %v2723_v8  ;;  %s3286_s16 = smov (!%p1881_p2, %s107_s16), 55  ;;  %v2763_v18 = vld [vmem:[#allocation7 + $0x60] ss:$16 sps:$4 sm:$0xff]   ;;  %s2796_s27 = sld [smem:[#allocation3 + $0x87]] }
  0x3a   :  { %96 = vst [vmem:[#allocation2 + $0xb8] sm:$0xff] %v2658_v3  ;;  %97 = vst [vmem:[#allocation2 + $0xc0] sm:$0xff] %v2658_v3  ;;  %858 = vmatprep.subr.bf16.mxu0 %v2728_v10  ;;  %s3288_s3 = smov (!%p111_p3, %s2719_s3), 0  ;;  %s115_s17 = sshra.s32 %s3286_s16, 3  ;;  %v2766_v19 = vld [vmem:[#allocation7 + $0x44] ss:$16 sps:$4 sm:$0xff]  }
  0x3b   :  { %98 = vst [vmem:[#allocation2 + $0xc8] sm:$0xff] %v2658_v3  ;;  %99 = vst [vmem:[#allocation2 + $0xd0] sm:$0xff] %v2658_v3  ;;  %s3290_s3 = smov (!%p1887_p4, %s3288_s3), 55  ;;  %898 = vmatpush1.bf16.msra.mxu1 %v2754_v16  ;;  %v2769_v20 = vld [vmem:[#allocation7 + $0x88] ss:$16 sps:$4 sm:$0xff]   ;;  %s118_s18 = sand.u32 7, %s3286_s16 }
  0x3c   :  { %100 = vst [vmem:[#allocation2 + $0xd8] sm:$0xff] %v2658_v3  ;;  %101 = vst [vmem:[#allocation2 + $0xe0] sm:$0xff] %v2658_v3  ;;  %899 = vmatprep.subr.bf16.mxu1 %v2759_v17  ;;  %v2772_v21 = vld [vmem:[#allocation7 + $0x6c] ss:$16 sps:$4 sm:$0xff]   ;;  %s2211_s19 = sshll.u32 %s115_s17, 6  ;;  %s124_s20 = sshra.s32 %s3290_s3, 3 }
  0x3d   :  { %102 = vst [vmem:[#allocation2 + $0xe8] sm:$0xff] %v2658_v3  ;;  %103 = vst [vmem:[#allocation2 + $0xf0] sm:$0xff] %v2658_v3  ;;  %859 = vmatpush1.bf16.msra.mxu0 %v2742_v13  ;;  %v2774_v22 = vld [vmem:[#allocation7 + $0x40] ss:$16 sps:$4 sm:$0xff]   ;;  %s121_s21 = sadd.s32 %s2211_s19, %s118_s18  ;;  %s127_s22 = sand.u32 7, %s3290_s3 }
  0x3e   :  { %104 = vst [vmem:[#allocation2 + $0xf8] sm:$0xff] %v2658_v3  ;;  %860 = vmatprep.subr.bf16.mxu0 %v2747_v14  ;;  %v2777_v24 = vld [vmem:[#allocation7 + $0x24] ss:$16 sps:$4 sm:$0xff]   ;;  %s2212_s23 = sshll.u32 %s124_s20, 6  ;;  %v2781_v25 = vld [vmem:[#allocation7 + $0x68] ss:$16 sps:$4 sm:$0xff]  }
  0x3f   :  { %900 = vmatpush1.bf16.msra.mxu1 %v2769_v20  ;;  %s122_s24 = scalar_lea.vmem [#allocation6], %s121_s21  ;;  %s1758_s25 = sadd.s32 %s2212_s23, %s127_s22  ;;  %v2786_v27 = vld [vmem:[#allocation7 + $0x4c] ss:$16 sps:$4 sm:$0xff]   ;;  %v2794_v30 = vld [vmem:[#allocation7 + $0x20] ss:$16 sps:$4 sm:$0xff]  }
  0x40   :  { %v123_v26 = vld [vmem:[%s122_s24] ss:$8 sm:$0xf]  ;;  %p142_p5 = scmp.gt.s32.totalorder %s2737_s15, 0  ;;  %901 = vmatprep.subr.bf16.mxu1 %v2772_v21  ;;  %p1898_p6 = scmp.lt.s32.totalorder %s2737_s15, 55 }
  0x41   :  { %861 = vmatpush1.bf16.msra.mxu0 %v2763_v18  ;;  %s1759_s26 = scalar_lea.vmem [#allocation6], %s1758_s25  ;;  %v2799_v32 = vld [vmem:[#allocation7 + $0x4] ss:$16 sps:$4 sm:$0xff]   ;;  %v2802_v33 = vld [vmem:[#allocation7 + $0x48] ss:$16 sps:$4 sm:$0xff]   ;;  %s2809_s28 = sld [smem:[#allocation3 + $0x1]] }
  0x42   :  { %862 = vmatprep.subr.bf16.mxu0 %v2766_v19  ;;  %v1896_v28 = vld [vmem:[%s1759_s26 + $0x20] ss:$8 sm:$0xf]  ;;  %s3292_s15 = smov (!%p142_p5, %s2737_s15), 0  ;;  %v2807_v34 = vld [vmem:[#allocation7 + $0x2c] ss:$16 sps:$4 sm:$0xff]  }
  0x43   :  { %v134_v31 = vadd.f32 %v1896_v28, %v123_v26  ;;  %902 = vmatpush1.bf16.msra.mxu1 %v2781_v25  ;;  %s3294_s15 = smov (!%p1898_p6, %s3292_s15), 55  ;;  %v2812_v35 = vld [vmem:[#allocation7] ss:$16 sps:$4 sm:$0xff]   ;;  %v2816_v36 = vld [vmem:[#allocation7 + $0x28] ss:$16 sps:$4 sm:$0xff]   ;;  %s2818_s8 = sld [smem:[#allocation3 + $0x6]] }
  0x44   :  { %903 = vmatprep.subr.bf16.mxu1 %v2786_v27  ;;  %s151_s29 = sshra.s32 %s3294_s15, 3  ;;  %s154_s30 = sand.u32 7, %s3294_s15  ;;  %v2823_v37 = vld [vmem:[#allocation7 + $0xc] ss:$16 sps:$4 sm:$0xff]   ;;  %v2830_v38 = vld [vmem:[#allocation7 + $0x8] ss:$16 sps:$4 sm:$0xff]  }
  0x45   :  { %863 = vmatpush1.bf16.msra.mxu0 %v2774_v22  ;;  %139 = vst.msk [vmem:[#allocation2] ss:$8 sm:$0xf] %vm2788_vm0, %v134_v31  ;;  %s2217_s6 = sshll.u32 %s151_s29, 6  ;;  %p147_p7 = scmp.gt.s32.totalorder %s2796_s27, 0 }
  0x46   :  { %864 = vmatprep.subr.bf16.mxu0 %v2777_v24  ;;  %s157_s7 = sadd.s32 %s2217_s6, %s154_s30  ;;  %p1904_p8 = scmp.lt.s32.totalorder %s2796_s27, 55 }
  0x47   :  { %904 = vmatpush1.bf16.msra.mxu1 %v2802_v33  ;;  %s2825_s9 = sld [smem:[#allocation3 + $0x81]]  ;;  %s3296_s27 = smov (!%p147_p7, %s2796_s27), 0 }
  0x48   :  { %905 = vmatprep.subr.bf16.mxu1 %v2807_v34  ;;  %p175_p9 = scmp.gt.s32.totalorder %s2809_s28, 0  ;;  %p1915_p10 = scmp.lt.s32.totalorder %s2809_s28, 55 }
  0x49   :  { %865 = vmatpush1.bf16.msra.mxu0 %v2794_v30  ;;  %s3298_s27 = smov (!%p1904_p8, %s3296_s27), 55  ;;  %p180_p11 = scmp.gt.s32.totalorder %s2818_s8, 0 }
  0x4a   :  { %866 = vmatprep.subr.bf16.mxu0 %v2799_v32  ;;  %s176_s2 = scalar_select %p175_p9, %s2809_s28, 0 }
  0x4b   :  { %906 = vmatpush1.bf16.msra.mxu1 %v2816_v36  ;;  %s160_s10 = sshra.s32 %s3298_s27, 3  ;;  %s163_s0 = sand.u32 7, %s3298_s27 }
  0x4c   :  { %907 = vmatprep.subr.bf16.mxu1 %v2823_v37  ;;  %s2218_s11 = sshll.u32 %s160_s10, 6  ;;  %s158_s12 = scalar_lea.vmem [#allocation6], %s157_s7 }
  0x4d   :  { %867 = vmatpush1.bf16.msra.mxu0 %v2812_v35  ;;  %v159_v39 = vld [vmem:[%s158_s12] ss:$8 sm:$0xf]  ;;  %s1766_s13 = sadd.s32 %s2218_s11, %s163_s0  ;;  %s2839_s14 = sld [smem:[#allocation3 + $0x86]] }
  0x4e   :  { %967 = vmatprep.subr.bf16.mxu0 %v2702_v0  ;;  %p1921_p12 = scmp.lt.s32.totalorder %s2818_s8, 55  ;;  %s1767_s1 = scalar_lea.vmem [#allocation6], %s1766_s13 }
  0x4f   :  { %908 = vmatpush1.bf16.msra.mxu1 %v2830_v38  ;;  %v1913_v40 = vld [vmem:[%s1767_s1 + $0x20] ss:$8 sm:$0xf]  ;;  %s3300_s2 = smov (!%p1915_p10, %s176_s2), 55  ;;  %s3302_s8 = smov (!%p180_p11, %s2818_s8), 0 }
  0x50   :  { %1008 = vmatprep.subr.bf16.mxu1 %v2721_v7  ;;  %v170_v41 = vadd.f32 %v1913_v40, %v159_v39  ;;  %s184_s3 = sshra.s32 %s3300_s2, 3  ;;  %s187_s15 = sand.u32 7, %s3300_s2 }
  0x51   :  { %s3304_s8 = smov (!%p1921_p12, %s3302_s8), 55  ;;  %s2223_s16 = sshll.u32 %s184_s3, 6 }
  0x52   :  { %172 = vst.msk [vmem:[#allocation2 + $0x1] ss:$8 sm:$0xf] %vm2788_vm0, %v170_v41  ;;  %p208_p13 = scmp.gt.s32.totalorder %s2825_s9, 0  ;;  %s190_s17 = sadd.s32 %s2223_s16, %s187_s15 }
  0x53   :  { %s193_s18 = sshra.s32 %s3304_s8, 3  ;;  %s196_s19 = sand.u32 7, %s3304_s8 }
  0x54   :  { %s2224_s20 = sshll.u32 %s193_s18, 6  ;;  %p213_p0 = scmp.gt.s32.totalorder %s2839_s14, 0 }
  0x55   :  { %s1774_s21 = sadd.s32 %s2224_s20, %s196_s19  ;;  %p1932_p1 = scmp.lt.s32.totalorder %s2825_s9, 55 }
  0x56   :  { %p1938_p2 = scmp.lt.s32.totalorder %s2839_s14, 55  ;;  %s191_s22 = scalar_lea.vmem [#allocation6], %s190_s17 }
  0x57   :  { %v192_v43 = vld [vmem:[%s191_s22] ss:$8 sm:$0xf]  ;;  %s3306_s9 = smov (!%p208_p13, %s2825_s9), 0  ;;  %s3308_s14 = smov (!%p213_p0, %s2839_s14), 0 }
  0x58   :  { %s1775_s23 = scalar_lea.vmem [#allocation6], %s1774_s21  ;;  %s3310_s9 = smov (!%p1932_p1, %s3306_s9), 55 }
  0x59   :  { %v668_v42 = vld [vmem:[#allocation2] sm:$0xff]  ;;  %s3312_s14 = smov (!%p1938_p2, %s3308_s14), 55  ;;  %s217_s24 = sshra.s32 %s3310_s9, 3  ;;  %v670_v47 = vld [vmem:[#allocation2 + $0x18] sm:$0xff]  ;;  %v669_v52 = vld [vmem:[#allocation2 + $0x10] sm:$0xff] }
  0x5a   :  { %v2151_v44 = vmul.f32 -1.442695, %v668_v42  ;;  %v1930_v45 = vld [vmem:[%s1775_s23 + $0x20] ss:$8 sm:$0xf]  ;;  %s220_s25 = sand.u32 7, %s3310_s9 }
  0x5b   :  { %v203_v46 = vadd.f32 %v1930_v45, %v192_v43  ;;  %s2229_s26 = sshll.u32 %s217_s24, 6  ;;  %s226_s27 = sshra.s32 %s3312_s14, 3  ;;  %v2152_v49 = vmul.f32 -1.442695, %v670_v47 }
  0x5c   :  { %2416 = vpow2.f32 %v2151_v44  ;;  %s223_s28 = sadd.s32 %s2229_s26, %s220_s25  ;;  %s229_s29 = sand.u32 7, %s3312_s14 }
  0x5d   :  { %205 = vst.msk [vmem:[#allocation2 + $0x20] ss:$8 sm:$0xf] %vm2788_vm0, %v203_v46  ;;  %s2230_s30 = sshll.u32 %s226_s27, 6  ;;  %s224_s6 = scalar_lea.vmem [#allocation6], %s223_s28  ;;  %2418 = vpow2.f32 %v2152_v49 }
  0x5e   :  { %v225_v48 = vld [vmem:[%s224_s6] ss:$8 sm:$0xf]  ;;  %s1782_s7 = sadd.s32 %s2230_s30, %s229_s29  ;;  %2420 = vtanh.f32 %v669_v52  ;;  %s1948_s9 = sld [smem:[#allocation3 + $0x2]] }
  0x5f   :  { %s1783_s8 = scalar_lea.vmem [#allocation6], %s1782_s7  ;;  %s1954_s2 = sld [smem:[#allocation3 + $0x5]] }
  0x60   :  { %v1947_v50 = vld [vmem:[%s1783_s8 + $0x20] ss:$8 sm:$0xf]  ;;  %s1965_s10 = sld [smem:[#allocation3 + $0x82]] }
  0x61   :  { %v236_v51 = vadd.f32 %v1947_v50, %v225_v48  ;;  %s2895_s0 = sld [smem:[#allocation3 + $0x85]] }
  0x62   :  { %s1982_s29 = sld [smem:[#allocation3 + $0x3]] }
  0x63   :  { %238 = vst.msk [vmem:[#allocation2 + $0x21] ss:$8 sm:$0xf] %vm2788_vm0, %v236_v51  ;;  %s1988_s30 = sld [smem:[#allocation3 + $0x4]] }
  0x64   :  { %p241_p3 = scmp.gt.s32.totalorder %s1948_s9, 0  ;;  %p1949_p4 = scmp.lt.s32.totalorder %s1948_s9, 55 }
  0x65   :  { %p246_p5 = scmp.gt.s32.totalorder %s1954_s2, 0  ;;  %p1955_p6 = scmp.lt.s32.totalorder %s1954_s2, 55 }
  0x66   :  { %s3314_s9 = smov (!%p241_p3, %s1948_s9), 0  ;;  %p274_p7 = scmp.gt.s32.totalorder %s1965_s10, 0 }
  0x67   :  { %s3316_s2 = smov (!%p246_p5, %s1954_s2), 0  ;;  %s3318_s9 = smov (!%p1949_p4, %s3314_s9), 55 }
  0x68   :  { %s3320_s2 = smov (!%p1955_p6, %s3316_s2), 55  ;;  %s250_s11 = sshra.s32 %s3318_s9, 3 }
  0x69   :  { %v2417_v53 = vpop.eup %2416  ;;  %s253_s12 = sand.u32 7, %s3318_s9  ;;  %s2235_s13 = sshll.u32 %s250_s11, 6 }
  0x6a   :  { %v674_v54 = vadd.f32 1.0, %v2417_v53  ;;  %v2419_v55 = vpop.eup %2418  ;;  %s259_s14 = sshra.s32 %s3320_s2, 3  ;;  %s2897_s1 = sadd.s32 %s2235_s13, %s253_s12  ;;  %v687_v40 = vld [vmem:[#allocation2 + $0x20] sm:$0xff]  ;;  %v688_v42 = vld [vmem:[#allocation2 + $0x28] sm:$0xff] }
  0x6b   :  { %v681_v56 = vadd.f32 1.0, %v2419_v55  ;;  %v2421_v57 = vpop.eup %2420  ;;  %s262_s3 = sand.u32 7, %s3320_s2  ;;  %s2236_s15 = sshll.u32 %s259_s14, 6  ;;  %v689_v55 = vld [vmem:[#allocation2 + $0x30] sm:$0xff] }
  0x6c   :  { %2422 = vrcp.f32 %v674_v54  ;;  %s257_s16 = scalar_lea.vmem [#allocation6], %s2897_s1  ;;  %s2902_s17 = sadd.s32 %s2236_s15, %s262_s3  ;;  %v690_v54 = vld [vmem:[#allocation2 + $0x38] sm:$0xff] }
  0x6d   :  { %2424 = vrcp.f32 %v681_v56  ;;  %v258_v3 = vld [vmem:[%s257_s16] ss:$8 sm:$0xf]  ;;  %p1966_p8 = scmp.lt.s32.totalorder %s1965_s10, 55  ;;  %s1791_s18 = scalar_lea.vmem [#allocation6], %s2902_s17 }
  0x6e   :  { %v1964_v23 = vld [vmem:[%s1791_s18 + $0x20] ss:$8 sm:$0xf]  ;;  %s3322_s10 = smov (!%p274_p7, %s1965_s10), 0  ;;  %p279_p9 = scmp.gt.s32.totalorder %s2895_s0, 0 }
  0x6f   :  { %v269_v26 = vadd.f32 %v1964_v23, %v258_v3  ;;  %p1972_p10 = scmp.lt.s32.totalorder %s2895_s0, 55  ;;  %s3324_s10 = smov (!%p1966_p8, %s3322_s10), 55 }
  0x70   :  { %s3326_s0 = smov (!%p279_p9, %s2895_s0), 0  ;;  %s283_s19 = sshra.s32 %s3324_s10, 3 }
  0x71   :  { %271 = vst.msk [vmem:[#allocation2 + $0x40] ss:$8 sm:$0xf] %vm2788_vm0, %v269_v26  ;;  %s286_s20 = sand.u32 7, %s3324_s10  ;;  %s3328_s0 = smov (!%p1972_p10, %s3326_s0), 55 }
  0x72   :  { %s2241_s21 = sshll.u32 %s283_s19, 6  ;;  %s292_s23 = sshra.s32 %s3328_s0, 3 }
  0x73   :  { %s2912_s22 = sadd.s32 %s2241_s21, %s286_s20  ;;  %s295_s24 = sand.u32 7, %s3328_s0 }
  0x74   :  { %s2242_s25 = sshll.u32 %s292_s23, 6  ;;  %s290_s26 = scalar_lea.vmem [#allocation6], %s2912_s22 }
  0x75   :  { %v291_v28 = vld [vmem:[%s290_s26] ss:$8 sm:$0xf]  ;;  %s2917_s27 = sadd.s32 %s2242_s25, %s295_s24  ;;  %s1999_s6 = sld [smem:[#allocation3 + $0x83]] }
  0x76   :  { %s1799_s28 = scalar_lea.vmem [#allocation6], %s2917_s27  ;;  %s2962_s7 = sld [smem:[#allocation3 + $0x84]] }
  0x77   :  { %v1981_v31 = vld [vmem:[%s1799_s28 + $0x20] ss:$8 sm:$0xf]  ;;  %p307_p11 = scmp.gt.s32.totalorder %s1982_s29, 0  ;;  %p1983_p12 = scmp.lt.s32.totalorder %s1982_s29, 55 }
  0x78   :  { %v302_v39 = vadd.f32 %v1981_v31, %v291_v28  ;;  %p312_p13 = scmp.gt.s32.totalorder %s1988_s30, 0  ;;  %p1989_p0 = scmp.lt.s32.totalorder %s1988_s30, 55 }
  0x79   :  { %v2423_v58 = vpop.eup %2422  ;;  %s3330_s29 = smov (!%p307_p11, %s1982_s29), 0  ;;  %s2084_s1 = sld [smem:[#allocation3 + $0x6]] }
  0x7a   :  { %v2858_v59 = vmul.f32 %v2423_v58, %v2421_v57  ;;  %v2425_v60 = vpop.eup %2424  ;;  %304 = vst.msk [vmem:[#allocation2 + $0x41] ss:$8 sm:$0xf] %vm2788_vm0, %v302_v39  ;;  %s3332_s30 = smov (!%p312_p13, %s1988_s30), 0  ;;  %s3334_s29 = smov (!%p1983_p12, %s3330_s29), 55 }
  0x7b   :  { %s3336_s30 = smov (!%p1989_p0, %s3332_s30), 55  ;;  %s316_s8 = sshra.s32 %s3334_s29, 3 }
  0x7c   :  { %2426 = vtanh.f32 %v2858_v59  ;;  %s319_s9 = sand.u32 7, %s3334_s29  ;;  %s2247_s2 = sshll.u32 %s316_s8, 6 }
  0x7d   :  { %s325_s10 = sshra.s32 %s3336_s30, 3  ;;  %s2964_s0 = sadd.s32 %s2247_s2, %s319_s9 }
  0x7e   :  { %s328_s11 = sand.u32 7, %s3336_s30  ;;  %s2248_s12 = sshll.u32 %s325_s10, 6 }
  0x7f   :  { %s323_s13 = scalar_lea.vmem [#allocation6], %s2964_s0  ;;  %s2969_s14 = sadd.s32 %s2248_s12, %s328_s11 }
  0x80   :  { %p340_p1 = scmp.gt.s32.totalorder %s1999_s6, 0  ;;  %p2000_p2 = scmp.lt.s32.totalorder %s1999_s6, 55 }
  0x81   :  { %s1807_s3 = scalar_lea.vmem [#allocation6], %s2969_s14  ;;  %p345_p3 = scmp.gt.s32.totalorder %s2962_s7, 0 }
  0x82   :  { %s3338_s6 = smov (!%p340_p1, %s1999_s6), 0  ;;  %p2006_p4 = scmp.lt.s32.totalorder %s2962_s7, 55 }
  0x83   :  { %s3340_s6 = smov (!%p2000_p2, %s3338_s6), 55  ;;  %s3342_s7 = smov (!%p345_p3, %s2962_s7), 0 }
  0x84   :  { %s349_s15 = sshra.s32 %s3340_s6, 3  ;;  %s352_s19 = sand.u32 7, %s3340_s6 }
  0x85   :  { %s3344_s7 = smov (!%p2006_p4, %s3342_s7), 55  ;;  %s2253_s20 = sshll.u32 %s349_s15, 6 }
  0x86   :  { %s2979_s21 = sadd.s32 %s2253_s20, %s352_s19  ;;  %s358_s23 = sshra.s32 %s3344_s7, 3 }
  0x87   :  { %s361_s24 = sand.u32 7, %s3344_s7  ;;  %s2254_s25 = sshll.u32 %s358_s23, 6 }
  0x88   :  { %s356_s29 = scalar_lea.vmem [#allocation6], %s2979_s21  ;;  %s2984_s30 = sadd.s32 %s2254_s25, %s361_s24 }
  0x89   :  { %v2427_v61 = vpop.eup %2426  ;;  %s1815_s8 = scalar_lea.vmem [#allocation6], %s2984_s30  ;;  %s2101_s17 = sld [smem:[#allocation3 + $0x86]] }
  0x8a   :  { %v686_v62 = vmul.f32 %v2427_v61, %v2425_v60  ;;  %p505_p5 = scmp.gt.s32.totalorder %s2084_s1, 0  ;;  %p2085_p6 = scmp.lt.s32.totalorder %s2084_s1, 55 }
  0x8b   :  { %s2118_s24 = sld [smem:[#allocation3 + $0x7]] }
  0x8c   :  { %v691_v63 = vpack.c.bf16 %v686_v62, %v686_v62  ;;  %s3346_s1 = smov (!%p505_p5, %s2084_s1), 0  ;;  %s575_s25 = sld [smem:[#allocation3]] }
  0x8d   :  { %s3350_s1 = smov (!%p2085_p6, %s3346_s1), 55  ;;  %s3241_s30 = sld [smem:[#allocation3 + $0x80]] }
  0x8e   :  { %885 = vmatmul.mubr.bf16.vlgmr.msra.gmra.mxu0 %v691_v63  ;;  %926 = vmatmul.mubr.bf16.vlgmr.msra.gmra.mxu1 %v691_v63  ;;  %s514_s22 = sshra.s32 %s3350_s1, 3 }
  0x8f   :  { %968 = vmatpush1.bf16.msra.mxu0 %v2704_v1  ;;  %1009 = vmatpush1.bf16.msra.mxu1 %v2725_v9  ;;  %s2283_s27 = sshll.u32 %s514_s22, 6  ;;  %p538_p9 = scmp.gt.s32.totalorder %s2101_s17, 0 }
  0x90   :  { %969 = vmatprep.subr.bf16.mxu0 %v2711_v4  ;;  %1010 = vmatprep.subr.bf16.mxu1 %v2734_v11  ;;  %p2102_p10 = scmp.lt.s32.totalorder %s2101_s17, 55 }
  0x91   :  { %999 = vmatprep.mubr.bf16.mxu0 %v2657_v2  ;;  %1040 = vmatprep.mubr.bf16.mxu1 %v2657_v2  ;;  %s3354_s17 = smov (!%p538_p9, %s2101_s17), 0  ;;  %p571_p13 = scmp.gt.s32.totalorder %s2118_s24, 0 }
  0x92   :  { %s3356_s17 = smov (!%p2102_p10, %s3354_s17), 55  ;;  %p2119_p0 = scmp.lt.s32.totalorder %s2118_s24, 55 }
  0x93   :  { %970 = vmatpush1.bf16.msra.mxu0 %v2714_v5  ;;  %1011 = vmatpush1.bf16.msra.mxu1 %v2739_v12  ;;  %s547_s11 = sshra.s32 %s3356_s17, 3  ;;  %s550_s12 = sand.u32 7, %s3356_s17 }
  0x94   :  { %971 = vmatprep.subr.bf16.mxu0 %v2717_v6  ;;  %1012 = vmatprep.subr.bf16.mxu1 %v2749_v15  ;;  %p576_p1 = scmp.gt.s32.totalorder %s575_s25, 0  ;;  %p2124_p2 = scmp.lt.s32.totalorder %s575_s25, 55 }
  0x95   :  { %s3362_s24 = smov (!%p571_p13, %s2118_s24), 0  ;;  %p609_p5 = scmp.gt.s32.totalorder %s3241_s30, 0 }
  0x96   :  { %s3364_s25 = smov (!%p576_p1, %s575_s25), 0  ;;  %s3366_s24 = smov (!%p2119_p0, %s3362_s24), 55 }
  0x97   :  { %972 = vmatpush1.bf16.msra.mxu0 %v2723_v8  ;;  %1013 = vmatpush1.bf16.msra.mxu1 %v2754_v16  ;;  %s3368_s25 = smov (!%p2124_p2, %s3364_s25), 55  ;;  %p2141_p6 = scmp.lt.s32.totalorder %s3241_s30, 55 }
  0x98   :  { %973 = vmatprep.subr.bf16.mxu0 %v2728_v10  ;;  %1014 = vmatprep.subr.bf16.mxu1 %v2759_v17  ;;  %s589_s17 = sshra.s32 %s3368_s25, 3  ;;  %s592_s22 = sand.u32 7, %s3368_s25 }
  0x99   :  { %s3374_s30 = smov (!%p609_p5, %s3241_s30), 0 }
  0x9a   :  { %s3376_s30 = smov (!%p2141_p6, %s3374_s30), 55 }
  0x9b   :  { %974 = vmatpush1.bf16.msra.mxu0 %v2742_v13  ;;  %1015 = vmatpush1.bf16.msra.mxu1 %v2769_v20 }
  0x9c   :  { %975 = vmatprep.subr.bf16.mxu0 %v2747_v14  ;;  %1016 = vmatprep.subr.bf16.mxu1 %v2772_v21 }
  0x9f   :  { %976 = vmatpush1.bf16.msra.mxu0 %v2763_v18  ;;  %1017 = vmatpush1.bf16.msra.mxu1 %v2781_v25 }
  0xa0   :  { %977 = vmatprep.subr.bf16.mxu0 %v2766_v19  ;;  %1018 = vmatprep.subr.bf16.mxu1 %v2786_v27 }
  0xa3   :  { %978 = vmatpush1.bf16.msra.mxu0 %v2774_v22  ;;  %1019 = vmatpush1.bf16.msra.mxu1 %v2802_v33 }
  0xa4   :  { %979 = vmatprep.subr.bf16.mxu0 %v2777_v24  ;;  %1020 = vmatprep.subr.bf16.mxu1 %v2807_v34 }
  0xa7   :  { %980 = vmatpush1.bf16.msra.mxu0 %v2794_v30  ;;  %1021 = vmatpush1.bf16.msra.mxu1 %v2816_v36 }
  0xa8   :  { %981 = vmatprep.subr.bf16.mxu0 %v2799_v32  ;;  %1022 = vmatprep.subr.bf16.mxu1 %v2823_v37 }
  0xab   :  { %982 = vmatpush1.bf16.msra.mxu0 %v2812_v35  ;;  %1023 = vmatpush1.bf16.msra.mxu1 %v2830_v38 }
  0xac   :  { %1082 = vmatprep.subr.bf16.mxu0 %v2702_v0  ;;  %1123 = vmatprep.subr.bf16.mxu1 %v2721_v7 }
 0x14e   :  { %v886_v41 = vpop.f32.mrf.mxu0  ;;  %v927_v43 = vpop.f32.mrf.mxu1 }
 0x14f   :  { %v934_v44 = vadd.f32 %v886_v41, %v687_v40  ;;  %v936_v57 = vadd.f32 %v927_v43, %v689_v55 }
 0x150   :  { %v888_v45 = vpop.f32.mrf.mxu0  ;;  %v929_v46 = vpop.f32.mrf.mxu1 }
 0x151   :  { %v2185_v47 = vmul.f32 -1.442695, %v934_v44  ;;  %v935_v48 = vadd.f32 %v888_v45, %v688_v42  ;;  %v937_v56 = vadd.f32 %v929_v46, %v690_v54 }
 0x152   :  { %v890_v49 = vpop.f32.mrf.mxu0  ;;  %v931_v50 = vpop.f32.mrf.mxu1 }
 0x153   :  { %2428 = vpow2.f32 %v2185_v47  ;;  %v2187_v51 = vmul.f32 -1.442695, %v935_v48  ;;  %v2186_v58 = vmul.f32 -1.442695, %v937_v56  ;;  %v962_v50 = vld [vmem:[#allocation2 + $0x40] sm:$0xff] }
 0x154   :  { %v891_v52 = vpop.f32.mrf.mxu0  ;;  %v932_v53 = vpop.f32.mrf.mxu1  ;;  %v357_v47 = vld [vmem:[%s356_s29] ss:$8 sm:$0xf] }
 0x155   :  { %2430 = vpow2.f32 %v2187_v51  ;;  %v2015_v48 = vld [vmem:[%s1815_s8 + $0x20] ss:$8 sm:$0xf] }
 0x156   :  { %2432 = vtanh.f32 %v936_v57  ;;  %v368_v49 = vadd.f32 %v2015_v48, %v357_v47  ;;  %v963_v53 = vld [vmem:[#allocation2 + $0x48] sm:$0xff] }
 0x157   :  { %2434 = vpow2.f32 %v2186_v58 }
 0x158   :  { %370 = vst.msk [vmem:[#allocation2 + $0x61] ss:$8 sm:$0xf] %vm2788_vm0, %v368_v49 }
 0x160   :  { %v2429_v60 = vpop.eup %2428 }
 0x161   :  { %v941_v61 = vadd.f32 1.0, %v2429_v60 }
 0x162   :  { %v2431_v62 = vpop.eup %2430 }
 0x163   :  { %2436 = vrcp.f32 %v941_v61  ;;  %v954_v63 = vadd.f32 1.0, %v2431_v62  ;;  %v2433_v3 = vpop.eup %2432 }
 0x164   :  { %v2435_v23 = vpop.eup %2434 }
 0x165   :  { %2438 = vrcp.f32 %v954_v63  ;;  %v948_v31 = vadd.f32 1.0, %v2435_v23  ;;  %v965_v23 = vld [vmem:[#allocation2 + $0x58] sm:$0xff] }
 0x167   :  { %2440 = vrcp.f32 %v948_v31 }
 0x170   :  { %v2437_v26 = vpop.eup %2436 }
 0x171   :  { %v958_v40 = vmul.f32 %v2437_v26, %v2433_v3 }
 0x172   :  { %v2439_v28 = vpop.eup %2438 }
 0x173   :  { %v957_v39 = vmul.f32 %v2439_v28, %v2858_v59  ;;  %v1998_v59 = vld [vmem:[%s1807_s3 + $0x20] ss:$8 sm:$0xf] }
 0x174   :  { %v2441_v42 = vpop.eup %2440  ;;  %v964_v28 = vld [vmem:[#allocation2 + $0x50] sm:$0xff] }
 0x175   :  { %v2925_v41 = vadd.f32 %v958_v40, %v957_v39 }
 0x177   :  { %2442 = vtanh.f32 %v2925_v41 }
 0x184   :  { %v2443_v43 = vpop.eup %2442 }
 0x185   :  { %v961_v44 = vmul.f32 %v2443_v43, %v2441_v42 }
 0x187   :  { %v966_v45 = vpack.c.bf16 %v961_v44, %v961_v44 }
 0x189   :  { %1000 = vmatmul.mubr.bf16.vlgmr.msra.gmra.mxu0 %v966_v45  ;;  %1041 = vmatmul.mubr.bf16.vlgmr.msra.gmra.mxu1 %v966_v45 }
 0x18a   :  { %1083 = vmatpush1.bf16.msra.mxu0 %v2704_v1  ;;  %1124 = vmatpush1.bf16.msra.mxu1 %v2725_v9 }
 0x18b   :  { %1084 = vmatprep.subr.bf16.mxu0 %v2711_v4  ;;  %1125 = vmatprep.subr.bf16.mxu1 %v2734_v11 }
 0x18c   :  { %1114 = vmatprep.mubr.bf16.mxu0 %v2657_v2  ;;  %1155 = vmatprep.mubr.bf16.mxu1 %v2657_v2 }
 0x18e   :  { %1085 = vmatpush1.bf16.msra.mxu0 %v2714_v5  ;;  %1126 = vmatpush1.bf16.msra.mxu1 %v2739_v12 }
 0x18f   :  { %1086 = vmatprep.subr.bf16.mxu0 %v2717_v6  ;;  %1127 = vmatprep.subr.bf16.mxu1 %v2749_v15 }
 0x192   :  { %1087 = vmatpush1.bf16.msra.mxu0 %v2723_v8  ;;  %1128 = vmatpush1.bf16.msra.mxu1 %v2754_v16 }
 0x193   :  { %1088 = vmatprep.subr.bf16.mxu0 %v2728_v10  ;;  %1129 = vmatprep.subr.bf16.mxu1 %v2759_v17 }
 0x196   :  { %1089 = vmatpush1.bf16.msra.mxu0 %v2742_v13  ;;  %1130 = vmatpush1.bf16.msra.mxu1 %v2769_v20 }
 0x197   :  { %1090 = vmatprep.subr.bf16.mxu0 %v2747_v14  ;;  %1131 = vmatprep.subr.bf16.mxu1 %v2772_v21 }
 0x19a   :  { %1091 = vmatpush1.bf16.msra.mxu0 %v2763_v18  ;;  %1132 = vmatpush1.bf16.msra.mxu1 %v2781_v25 }
 0x19b   :  { %1092 = vmatprep.subr.bf16.mxu0 %v2766_v19  ;;  %1133 = vmatprep.subr.bf16.mxu1 %v2786_v27 }
 0x19e   :  { %1093 = vmatpush1.bf16.msra.mxu0 %v2774_v22  ;;  %1134 = vmatpush1.bf16.msra.mxu1 %v2802_v33 }
 0x19f   :  { %1094 = vmatprep.subr.bf16.mxu0 %v2777_v24  ;;  %1135 = vmatprep.subr.bf16.mxu1 %v2807_v34 }
 0x1a2   :  { %1095 = vmatpush1.bf16.msra.mxu0 %v2794_v30  ;;  %1136 = vmatpush1.bf16.msra.mxu1 %v2816_v36 }
 0x1a3   :  { %1096 = vmatprep.subr.bf16.mxu0 %v2799_v32  ;;  %1137 = vmatprep.subr.bf16.mxu1 %v2823_v37 }
 0x1a6   :  { %1097 = vmatpush1.bf16.msra.mxu0 %v2812_v35  ;;  %1138 = vmatpush1.bf16.msra.mxu1 %v2830_v38 }
 0x1a7   :  { %1197 = vmatprep.subr.bf16.mxu0 %v2702_v0  ;;  %1238 = vmatprep.subr.bf16.mxu1 %v2721_v7  ;;  %v324_v0 = vld [vmem:[%s323_s13] ss:$8 sm:$0xf] }
 0x1a8   :  { %v335_v46 = vadd.f32 %v1998_v59, %v324_v0 }
 0x1aa   :  { %337 = vst.msk [vmem:[#allocation2 + $0x60] ss:$8 sm:$0xf] %vm2788_vm0, %v335_v46 }
 0x249   :  { %v1001_v51 = vpop.f32.mrf.mxu0  ;;  %v1042_v52 = vpop.f32.mrf.mxu1 }
 0x24a   :  { %v1049_v54 = vadd.f32 %v1001_v51, %v962_v50  ;;  %v1051_v40 = vadd.f32 %v1042_v52, %v964_v28 }
 0x24b   :  { %v1003_v55 = vpop.f32.mrf.mxu0  ;;  %v1044_v56 = vpop.f32.mrf.mxu1 }
 0x24c   :  { %v2188_v57 = vmul.f32 -1.442695, %v1049_v54  ;;  %v1050_v58 = vadd.f32 %v1003_v55, %v963_v53  ;;  %v1052_v26 = vadd.f32 %v1044_v56, %v965_v23 }
 0x24d   :  { %v1005_v60 = vpop.f32.mrf.mxu0  ;;  %v1046_v61 = vpop.f32.mrf.mxu1 }
 0x24e   :  { %2444 = vpow2.f32 %v2188_v57  ;;  %v2190_v62 = vmul.f32 -1.442695, %v1050_v58  ;;  %v2189_v31 = vmul.f32 -1.442695, %v1052_v26  ;;  %v1080_v58 = vld [vmem:[#allocation2 + $0x78] sm:$0xff]  ;;  %v1079_v61 = vld [vmem:[#allocation2 + $0x70] sm:$0xff] }
 0x24f   :  { %v1006_v63 = vpop.f32.mrf.mxu0  ;;  %v1047_v3 = vpop.f32.mrf.mxu1 }
 0x250   :  { %2446 = vpow2.f32 %v2190_v62 }
 0x251   :  { %2448 = vpow2.f32 %v2189_v31 }
 0x25b   :  { %v2445_v39 = vpop.eup %2444 }
 0x25c   :  { %v1056_v42 = vadd.f32 1.0, %v2445_v39 }
 0x25d   :  { %v2447_v43 = vpop.eup %2446 }
 0x25e   :  { %2450 = vrcp.f32 %v1056_v42  ;;  %v1069_v44 = vadd.f32 1.0, %v2447_v43  ;;  %v2449_v45 = vpop.eup %2448 }
 0x25f   :  { %2452 = vtanh.f32 %v1051_v40  ;;  %v1063_v47 = vadd.f32 1.0, %v2449_v45 }
 0x260   :  { %2454 = vrcp.f32 %v1069_v44 }
 0x261   :  { %2456 = vrcp.f32 %v1063_v47 }
 0x26b   :  { %v2451_v0 = vpop.eup %2450 }
 0x26c   :  { %v2453_v59 = vpop.eup %2452 }
 0x26d   :  { %v2455_v46 = vpop.eup %2454  ;;  %v1073_v48 = vmul.f32 %v2453_v59, %v2451_v0 }
 0x26e   :  { %v1072_v49 = vmul.f32 %v2455_v46, %v2925_v41  ;;  %v2457_v51 = vpop.eup %2456 }
 0x270   :  { %v2992_v50 = vadd.f32 %v1073_v48, %v1072_v49  ;;  %v3047_v49 = vld [vmem:[#allocation7 + $0xe0] ss:$16 sps:$4 sm:$0xff]  }
 0x272   :  { %2458 = vtanh.f32 %v2992_v50 }
 0x27f   :  { %v2459_v52 = vpop.eup %2458 }
 0x280   :  { %v1076_v53 = vmul.f32 %v2459_v52, %v2457_v51  ;;  %v3050_v51 = vld [vmem:[#allocation7 + $0xe8] ss:$16 sps:$4 sm:$0xff]   ;;  %v3056_v52 = vld [vmem:[#allocation7 + $0xcc] ss:$16 sps:$4 sm:$0xff]  }
 0x282   :  { %v1081_v54 = vpack.c.bf16 %v1076_v53, %v1076_v53  ;;  %v3061_v53 = vld [vmem:[#allocation7 + $0xc0] ss:$16 sps:$4 sm:$0xff]  }
 0x284   :  { %1115 = vmatmul.mubr.bf16.vlgmr.msra.gmra.mxu0 %v1081_v54  ;;  %1156 = vmatmul.mubr.bf16.vlgmr.msra.gmra.mxu1 %v1081_v54  ;;  %v3064_v54 = vld [vmem:[#allocation7 + $0xc8] ss:$16 sps:$4 sm:$0xff]  }
 0x285   :  { %1198 = vmatpush1.bf16.msra.mxu0 %v2704_v1  ;;  %1239 = vmatpush1.bf16.msra.mxu1 %v2725_v9  ;;  %v3027_v1 = vld [vmem:[#allocation7 + $0xe4] ss:$16 sps:$4 sm:$0xff]   ;;  %v2049_v9 = vld [vmem:[%s356_s29 + $0x20] ss:$8 sm:$0xf]  ;;  %s2134_s29 = sld [smem:[#allocation3 + $0x87]] }
 0x286   :  { %1199 = vmatprep.subr.bf16.mxu0 %v2711_v4  ;;  %1240 = vmatprep.subr.bf16.mxu1 %v2734_v11  ;;  %v390_v4 = vld [vmem:[%s1807_s3] ss:$8 sm:$0xf] }
 0x287   :  { %1229 = vmatprep.mubr.bf16.mxu0 %v2657_v2  ;;  %1270 = vmatprep.mubr.bf16.mxu1 %v2657_v2  ;;  %v1077_v11 = vld [vmem:[#allocation2 + $0x60] sm:$0xff] }
 0x289   :  { %1200 = vmatpush1.bf16.msra.mxu0 %v2714_v5  ;;  %1241 = vmatpush1.bf16.msra.mxu1 %v2739_v12  ;;  %v2032_v5 = vld [vmem:[%s323_s13 + $0x20] ss:$8 sm:$0xf]  ;;  %s2289_s13 = sshll.u32 %s547_s11, 6  ;;  %s625_s11 = sand.u32 7, %s3376_s30 }
 0x28a   :  { %1201 = vmatprep.subr.bf16.mxu0 %v2717_v6  ;;  %1242 = vmatprep.subr.bf16.mxu1 %v2749_v15  ;;  %v401_v6 = vadd.f32 %v2032_v5, %v390_v4  ;;  %v3067_v4 = vld [vmem:[#allocation7 + $0xa4] ss:$16 sps:$4 sm:$0xff]   ;;  %v3070_v5 = vld [vmem:[#allocation7 + $0xac] ss:$16 sps:$4 sm:$0xff]   ;;  %s553_s14 = sadd.s32 %s2289_s13, %s550_s12 }
 0x28b   :  { %s554_s20 = scalar_lea.vmem [#allocation6], %s553_s14  ;;  %p604_p3 = scmp.gt.s32.totalorder %s2134_s29, 0 }
 0x28c   :  { %403 = vst.msk [vmem:[#allocation2 + $0x80] ss:$8 sm:$0xf] %vm2788_vm0, %v401_v6  ;;  %v3073_v6 = vld [vmem:[#allocation7 + $0xa0] ss:$16 sps:$4 sm:$0xff]   ;;  %p2135_p4 = scmp.lt.s32.totalorder %s2134_s29, 55 }
 0x28d   :  { %1202 = vmatpush1.bf16.msra.mxu0 %v2723_v8  ;;  %1243 = vmatpush1.bf16.msra.mxu1 %v2754_v16  ;;  %v423_v8 = vld [vmem:[%s1815_s8] ss:$8 sm:$0xf]  ;;  %s580_s8 = sshra.s32 %s3366_s24, 3  ;;  %s3370_s29 = smov (!%p604_p3, %s2134_s29), 0 }
 0x28e   :  { %1203 = vmatprep.subr.bf16.mxu0 %v2728_v10  ;;  %1244 = vmatprep.subr.bf16.mxu1 %v2759_v17  ;;  %v434_v10 = vadd.f32 %v2049_v9, %v423_v8  ;;  %v3076_v8 = vld [vmem:[#allocation7 + $0xa8] ss:$16 sps:$4 sm:$0xff]   ;;  %v3079_v9 = vld [vmem:[#allocation7 + $0x84] ss:$16 sps:$4 sm:$0xff]   ;;  %s3372_s29 = smov (!%p2135_p4, %s3370_s29), 55 }
 0x290   :  { %436 = vst.msk [vmem:[#allocation2 + $0x81] ss:$8 sm:$0xf] %vm2788_vm0, %v434_v10  ;;  %v3082_v10 = vld [vmem:[#allocation7 + $0x8c] ss:$16 sps:$4 sm:$0xff]  }
 0x291   :  { %1204 = vmatpush1.bf16.msra.mxu0 %v2742_v13  ;;  %1245 = vmatpush1.bf16.msra.mxu1 %v2769_v20 }
 0x292   :  { %1205 = vmatprep.subr.bf16.mxu0 %v2747_v14  ;;  %1246 = vmatprep.subr.bf16.mxu1 %v2772_v21 }
 0x295   :  { %1206 = vmatpush1.bf16.msra.mxu0 %v2763_v18  ;;  %1247 = vmatpush1.bf16.msra.mxu1 %v2781_v25 }
 0x296   :  { %1207 = vmatprep.subr.bf16.mxu0 %v2766_v19  ;;  %1248 = vmatprep.subr.bf16.mxu1 %v2786_v27 }
 0x299   :  { %1208 = vmatpush1.bf16.msra.mxu0 %v2774_v22  ;;  %1249 = vmatpush1.bf16.msra.mxu1 %v2802_v33 }
 0x29a   :  { %1209 = vmatprep.subr.bf16.mxu0 %v2777_v24  ;;  %1250 = vmatprep.subr.bf16.mxu1 %v2807_v34 }
 0x29d   :  { %1210 = vmatpush1.bf16.msra.mxu0 %v2794_v30  ;;  %1251 = vmatpush1.bf16.msra.mxu1 %v2816_v36 }
 0x29e   :  { %1211 = vmatprep.subr.bf16.mxu0 %v2799_v32  ;;  %1252 = vmatprep.subr.bf16.mxu1 %v2823_v37 }
 0x2a1   :  { %1212 = vmatpush1.bf16.msra.mxu0 %v2812_v35  ;;  %1253 = vmatpush1.bf16.msra.mxu1 %v2830_v38 }
 0x2a2   :  { %1312 = vmatprep.subr.bf16.mxu0 %v3027_v1  ;;  %1353 = vmatprep.subr.bf16.mxu1 %v2721_v7  ;;  %v1078_v7 = vld [vmem:[#allocation2 + $0x68] sm:$0xff] }
 0x344   :  { %v1116_v12 = vpop.f32.mrf.mxu0  ;;  %v1157_v13 = vpop.f32.mrf.mxu1 }
 0x345   :  { %v1164_v14 = vadd.f32 %v1116_v12, %v1077_v11  ;;  %v1166_v3 = vadd.f32 %v1157_v13, %v1079_v61  ;;  %v3085_v11 = vld [vmem:[#allocation7 + $0x80] ss:$16 sps:$4 sm:$0xff]   ;;  %v3089_v12 = vld [vmem:[#allocation7 + $0x64] ss:$16 sps:$4 sm:$0xff]  }
 0x346   :  { %v1118_v15 = vpop.f32.mrf.mxu0  ;;  %v1159_v16 = vpop.f32.mrf.mxu1  ;;  %v3093_v13 = vld [vmem:[#allocation7 + $0x60] ss:$16 sps:$4 sm:$0xff]  }
 0x347   :  { %v2191_v17 = vmul.f32 -1.442695, %v1164_v14  ;;  %v1165_v18 = vadd.f32 %v1118_v15, %v1078_v7  ;;  %v1167_v60 = vadd.f32 %v1159_v16, %v1080_v58  ;;  %v3097_v7 = vld [vmem:[#allocation7 + $0x44] ss:$16 sps:$4 sm:$0xff]  }
 0x348   :  { %v1120_v19 = vpop.f32.mrf.mxu0  ;;  %v1161_v41 = vpop.f32.mrf.mxu1 }
 0x349   :  { %2460 = vpow2.f32 %v2191_v17  ;;  %v2193_v55 = vmul.f32 -1.442695, %v1165_v18  ;;  %v2192_v62 = vmul.f32 -1.442695, %v1167_v60 }
 0x34a   :  { %v1121_v56 = vpop.f32.mrf.mxu0  ;;  %v1162_v57 = vpop.f32.mrf.mxu1 }
 0x34b   :  { %2462 = vpow2.f32 %v2193_v55  ;;  %v1195_v55 = vld [vmem:[#allocation2 + $0x98] sm:$0xff]  ;;  %v1194_v57 = vld [vmem:[#allocation2 + $0x90] sm:$0xff] }
 0x34c   :  { %2464 = vpow2.f32 %v2192_v62 }
 0x356   :  { %v2461_v63 = vpop.eup %2460 }
 0x357   :  { %v1171_v23 = vadd.f32 1.0, %v2461_v63 }
 0x358   :  { %v2463_v26 = vpop.eup %2462 }
 0x359   :  { %2466 = vrcp.f32 %v1171_v23  ;;  %v1184_v28 = vadd.f32 1.0, %v2463_v26  ;;  %v2465_v31 = vpop.eup %2464 }
 0x35a   :  { %2468 = vtanh.f32 %v1166_v3  ;;  %v1178_v43 = vadd.f32 1.0, %v2465_v31 }
 0x35b   :  { %2470 = vrcp.f32 %v1184_v28 }
 0x35c   :  { %2472 = vrcp.f32 %v1178_v43 }
 0x366   :  { %v2467_v39 = vpop.eup %2466 }
 0x367   :  { %v2469_v40 = vpop.eup %2468 }
 0x368   :  { %v2471_v42 = vpop.eup %2470  ;;  %v1188_v44 = vmul.f32 %v2469_v40, %v2467_v39 }
 0x369   :  { %v1187_v45 = vmul.f32 %v2471_v42, %v2992_v50  ;;  %v2473_v59 = vpop.eup %2472  ;;  %v3053_v50 = vld [vmem:[#allocation7 + $0xc4] ss:$16 sps:$4 sm:$0xff]  }
 0x36b   :  { %v3044_v0 = vadd.f32 %v1188_v44, %v1187_v45 }
 0x36d   :  { %2474 = vtanh.f32 %v3044_v0 }
 0x37a   :  { %v2475_v46 = vpop.eup %2474 }
 0x37b   :  { %v1191_v47 = vmul.f32 %v2475_v46, %v2473_v59 }
 0x37d   :  { %v1196_v48 = vpack.c.bf16 %v1191_v47, %v1191_v47  ;;  %v3150_v47 = vld [vmem:[#allocation7 + $0x6c] ss:$16 sps:$4 sm:$0xff]  }
 0x37f   :  { %1230 = vmatmul.mubr.bf16.vlgmr.msra.gmra.mxu0 %v1196_v48  ;;  %1271 = vmatmul.mubr.bf16.vlgmr.msra.gmra.mxu1 %v1196_v48  ;;  %v3154_v48 = vld [vmem:[#allocation7 + $0x68] ss:$16 sps:$4 sm:$0xff]  }
 0x380   :  { %1313 = vmatpush1.bf16.msra.mxu0 %v3047_v49  ;;  %1354 = vmatpush1.bf16.msra.mxu1 %v3050_v51 }
 0x381   :  { %1314 = vmatprep.subr.bf16.mxu0 %v3053_v50  ;;  %1355 = vmatprep.subr.bf16.mxu1 %v3056_v52 }
 0x382   :  { %1344 = vmatprep.mubr.bf16.mxu0 %v2657_v2  ;;  %1385 = vmatprep.mubr.bf16.mxu1 %v2657_v2 }
 0x384   :  { %1315 = vmatpush1.bf16.msra.mxu0 %v3061_v53  ;;  %1356 = vmatpush1.bf16.msra.mxu1 %v3064_v54 }
 0x385   :  { %1316 = vmatprep.subr.bf16.mxu0 %v3067_v4  ;;  %1357 = vmatprep.subr.bf16.mxu1 %v3070_v5 }
 0x388   :  { %1317 = vmatpush1.bf16.msra.mxu0 %v3073_v6  ;;  %1358 = vmatpush1.bf16.msra.mxu1 %v3076_v8 }
 0x389   :  { %1318 = vmatprep.subr.bf16.mxu0 %v3079_v9  ;;  %1359 = vmatprep.subr.bf16.mxu1 %v3082_v10 }
 0x38c   :  { %1319 = vmatpush1.bf16.msra.mxu0 %v3085_v11  ;;  %1360 = vmatpush1.bf16.msra.mxu1 %v2769_v20  ;;  %v3112_v20 = vld [vmem:[#allocation7 + $0xec] ss:$16 sps:$4 sm:$0xff]  }
 0x38d   :  { %1320 = vmatprep.subr.bf16.mxu0 %v3089_v12  ;;  %1361 = vmatprep.subr.bf16.mxu1 %v2772_v21  ;;  %v456_v21 = vld [vmem:[%s1791_s18] ss:$8 sm:$0xf]  ;;  %s3193_s18 = sld [smem:[#allocation3 + $0x81]] }
 0x390   :  { %1321 = vmatpush1.bf16.msra.mxu0 %v3093_v13  ;;  %1362 = vmatpush1.bf16.msra.mxu1 %v2781_v25  ;;  %v489_v25 = vld [vmem:[%s1799_s28] ss:$8 sm:$0xf] }
 0x391   :  { %1322 = vmatprep.subr.bf16.mxu0 %v3097_v7  ;;  %1363 = vmatprep.subr.bf16.mxu1 %v2786_v27  ;;  %v2083_v27 = vld [vmem:[%s290_s26 + $0x20] ss:$8 sm:$0xf]  ;;  %s517_s26 = sand.u32 7, %s3350_s1  ;;  %s583_s1 = sand.u32 7, %s3366_s24 }
 0x392   :  { %s520_s6 = sadd.s32 %s2283_s27, %s517_s26  ;;  %s2296_s26 = sshll.u32 %s589_s17, 6 }
 0x393   :  { %s521_s2 = scalar_lea.vmem [#allocation6], %s520_s6  ;;  %p543_p11 = scmp.gt.s32.totalorder %s3193_s18, 0 }
 0x394   :  { %1323 = vmatpush1.bf16.msra.mxu0 %v2774_v22  ;;  %1364 = vmatpush1.bf16.msra.mxu1 %v2802_v33  ;;  %v2066_v22 = vld [vmem:[%s257_s16 + $0x20] ss:$8 sm:$0xf]  ;;  %s2090_s16 = sld [smem:[#allocation3 + $0x1]]  ;;  %p2108_p12 = scmp.lt.s32.totalorder %s3193_s18, 55 }
 0x395   :  { %1324 = vmatprep.subr.bf16.mxu0 %v2777_v24  ;;  %1365 = vmatprep.subr.bf16.mxu1 %v2807_v34  ;;  %v467_v24 = vadd.f32 %v2066_v22, %v456_v21  ;;  %v3158_v21 = vld [vmem:[#allocation7 + $0x4c] ss:$16 sps:$4 sm:$0xff]   ;;  %v3161_v22 = vld [vmem:[#allocation7 + $0x40] ss:$16 sps:$4 sm:$0xff]   ;;  %s3358_s18 = smov (!%p543_p11, %s3193_s18), 0 }
 0x396   :  { %s3360_s18 = smov (!%p2108_p12, %s3358_s18), 55 }
 0x397   :  { %469 = vst.msk [vmem:[#allocation2 + $0xa0] ss:$8 sm:$0xf] %vm2788_vm0, %v467_v24  ;;  %v3164_v24 = vld [vmem:[#allocation7 + $0x48] ss:$16 sps:$4 sm:$0xff]   ;;  %s556_s3 = sshra.s32 %s3360_s18, 3 }
 0x398   :  { %1325 = vmatpush1.bf16.msra.mxu0 %v2794_v30  ;;  %1366 = vmatpush1.bf16.msra.mxu1 %v2816_v36  ;;  %v500_v30 = vadd.f32 %v2083_v27, %v489_v25  ;;  %v3167_v25 = vld [vmem:[#allocation7 + $0x24] ss:$16 sps:$4 sm:$0xff]   ;;  %v3170_v27 = vld [vmem:[#allocation7 + $0x2c] ss:$16 sps:$4 sm:$0xff]   ;;  %s559_s15 = sand.u32 7, %s3360_s18  ;;  %s2290_s19 = sshll.u32 %s556_s3, 6 }
 0x399   :  { %1326 = vmatprep.subr.bf16.mxu0 %v2799_v32  ;;  %1367 = vmatprep.subr.bf16.mxu1 %v2823_v37  ;;  %v1192_v32 = vld [vmem:[#allocation2 + $0x80] sm:$0xff]  ;;  %s1862_s21 = sadd.s32 %s2290_s19, %s559_s15 }
 0x39a   :  { %502 = vst.msk [vmem:[#allocation2 + $0xa1] ss:$8 sm:$0xf] %vm2788_vm0, %v500_v30  ;;  %v3173_v30 = vld [vmem:[#allocation7 + $0x20] ss:$16 sps:$4 sm:$0xff]   ;;  %p510_p7 = scmp.gt.s32.totalorder %s2090_s16, 0 }
 0x39b   :  { %p2091_p8 = scmp.lt.s32.totalorder %s2090_s16, 55  ;;  %s1863_s23 = scalar_lea.vmem [#allocation6], %s1862_s21 }
 0x39c   :  { %1327 = vmatpush1.bf16.msra.mxu0 %v2812_v35  ;;  %1368 = vmatpush1.bf16.msra.mxu1 %v2830_v38  ;;  %v1193_v35 = vld [vmem:[#allocation2 + $0x88] sm:$0xff]  ;;  %s3348_s16 = smov (!%p510_p7, %s2090_s16), 0 }
 0x39d   :  { %1427 = vmatprep.subr.bf16.mxu0 %v3027_v1  ;;  %1468 = vmatprep.subr.bf16.mxu1 %v3112_v20  ;;  %s3352_s16 = smov (!%p2091_p8, %s3348_s16), 55 }
 0x39e   :  { %s523_s28 = sshra.s32 %s3352_s16, 3  ;;  %s526_s7 = sand.u32 7, %s3352_s16 }
 0x39f   :  { %s2284_s9 = sshll.u32 %s523_s28, 6  ;;  %s2295_s16 = sshll.u32 %s580_s8, 6 }
 0x3a0   :  { %s1854_s10 = sadd.s32 %s2284_s9, %s526_s7  ;;  %s586_s18 = sadd.s32 %s2295_s16, %s583_s1 }
 0x3a1   :  { %s1855_s0 = scalar_lea.vmem [#allocation6], %s1854_s10  ;;  %s587_s27 = scalar_lea.vmem [#allocation6], %s586_s18 }
 0x3a2   :  { %s1870_s28 = sadd.s32 %s2296_s26, %s592_s22  ;;  %s613_s7 = sshra.s32 %s3372_s29, 3 }
 0x3a3   :  { %s1871_s6 = scalar_lea.vmem [#allocation6], %s1870_s28  ;;  %s616_s9 = sand.u32 7, %s3372_s29 }
 0x43f   :  { %v1231_v33 = vpop.f32.mrf.mxu0  ;;  %v1272_v34 = vpop.f32.mrf.mxu1 }
 0x440   :  { %v1279_v36 = vadd.f32 %v1231_v33, %v1192_v32  ;;  %v1281_v61 = vadd.f32 %v1272_v34, %v1194_v57  ;;  %v3176_v32 = vld [vmem:[#allocation7 + $0x28] ss:$16 sps:$4 sm:$0xff]   ;;  %v3179_v33 = vld [vmem:[#allocation7 + $0x4] ss:$16 sps:$4 sm:$0xff]   ;;  %v3182_v34 = vld [vmem:[#allocation7 + $0xc] ss:$16 sps:$4 sm:$0xff]  }
 0x441   :  { %v1233_v37 = vpop.f32.mrf.mxu0  ;;  %v1274_v38 = vpop.f32.mrf.mxu1 }
 0x442   :  { %v2194_v14 = vmul.f32 -1.442695, %v1279_v36  ;;  %v1280_v15 = vadd.f32 %v1233_v37, %v1193_v35  ;;  %v1282_v56 = vadd.f32 %v1274_v38, %v1195_v55  ;;  %v3185_v35 = vld [vmem:[#allocation7] ss:$16 sps:$4 sm:$0xff]   ;;  %v3188_v36 = vld [vmem:[#allocation7 + $0x8] ss:$16 sps:$4 sm:$0xff]  }
 0x443   :  { %v1235_v16 = vpop.f32.mrf.mxu0  ;;  %v1276_v17 = vpop.f32.mrf.mxu1  ;;  %v555_v38 = vld [vmem:[%s554_s20] ss:$8 sm:$0xf] }
 0x444   :  { %2476 = vpow2.f32 %v2194_v14  ;;  %v2196_v18 = vmul.f32 -1.442695, %v1280_v15  ;;  %v2195_v58 = vmul.f32 -1.442695, %v1282_v56  ;;  %v1307_v16 = vld [vmem:[#allocation2 + $0xa0] sm:$0xff] }
 0x445   :  { %v1236_v19 = vpop.f32.mrf.mxu0  ;;  %v1277_v41 = vpop.f32.mrf.mxu1  ;;  %v2117_v14 = vld [vmem:[%s1863_s23 + $0x20] ss:$8 sm:$0xf] }
 0x446   :  { %2478 = vpow2.f32 %v2196_v18  ;;  %v566_v15 = vadd.f32 %v2117_v14, %v555_v38  ;;  %v1308_v19 = vld [vmem:[#allocation2 + $0xa8] sm:$0xff] }
 0x447   :  { %2480 = vpow2.f32 %v2195_v58 }
 0x448   :  { %568 = vst.msk [vmem:[#allocation2 + $0xc1] ss:$8 sm:$0xf] %vm2788_vm0, %v566_v15 }
 0x451   :  { %v2477_v60 = vpop.eup %2476 }
 0x452   :  { %v1286_v62 = vadd.f32 1.0, %v2477_v60 }
 0x453   :  { %v2479_v63 = vpop.eup %2478 }
 0x454   :  { %2482 = vrcp.f32 %v1286_v62  ;;  %v1299_v3 = vadd.f32 1.0, %v2479_v63  ;;  %v2481_v23 = vpop.eup %2480 }
 0x455   :  { %2484 = vtanh.f32 %v1281_v61  ;;  %v1293_v39 = vadd.f32 1.0, %v2481_v23  ;;  %v1310_v23 = vld [vmem:[#allocation2 + $0xb8] sm:$0xff] }
 0x456   :  { %2486 = vrcp.f32 %v1299_v3 }
 0x457   :  { %2488 = vrcp.f32 %v1293_v39 }
 0x461   :  { %v2483_v26 = vpop.eup %2482 }
 0x462   :  { %v2485_v28 = vpop.eup %2484 }
 0x463   :  { %v2487_v31 = vpop.eup %2486  ;;  %v1303_v40 = vmul.f32 %v2485_v28, %v2483_v26  ;;  %v1309_v28 = vld [vmem:[#allocation2 + $0xb0] sm:$0xff] }
 0x464   :  { %v1302_v42 = vmul.f32 %v2487_v31, %v3044_v0  ;;  %v2489_v44 = vpop.eup %2488  ;;  %v3146_v0 = vld [vmem:[#allocation7 + $0x88] ss:$16 sps:$4 sm:$0xff]  }
 0x466   :  { %v3128_v43 = vadd.f32 %v1303_v40, %v1302_v42 }
 0x468   :  { %2490 = vtanh.f32 %v3128_v43 }
 0x475   :  { %v2491_v45 = vpop.eup %2490 }
 0x476   :  { %v1306_v59 = vmul.f32 %v2491_v45, %v2489_v44 }
 0x478   :  { %v1311_v46 = vpack.c.bf16 %v1306_v59, %v1306_v59 }
 0x47a   :  { %1345 = vmatmul.mubr.bf16.vlgmr.msra.gmra.mxu0 %v1311_v46  ;;  %1386 = vmatmul.mubr.bf16.vlgmr.msra.gmra.mxu1 %v1311_v46 }
 0x47b   :  { %1428 = vmatpush1.bf16.msra.mxu0 %v3047_v49  ;;  %1469 = vmatpush1.bf16.msra.mxu1 %v3050_v51 }
 0x47c   :  { %1429 = vmatprep.subr.bf16.mxu0 %v3053_v50  ;;  %1470 = vmatprep.subr.bf16.mxu1 %v3056_v52 }
 0x47d   :  { %1459 = vmatprep.mubr.bf16.mxu0 %v2657_v2  ;;  %1500 = vmatprep.mubr.bf16.mxu1 %v2657_v2 }
 0x47f   :  { %1430 = vmatpush1.bf16.msra.mxu0 %v3061_v53  ;;  %1471 = vmatpush1.bf16.msra.mxu1 %v3064_v54 }
 0x480   :  { %1431 = vmatprep.subr.bf16.mxu0 %v3067_v4  ;;  %1472 = vmatprep.subr.bf16.mxu1 %v3070_v5 }
 0x483   :  { %1432 = vmatpush1.bf16.msra.mxu0 %v3073_v6  ;;  %1473 = vmatpush1.bf16.msra.mxu1 %v3076_v8 }
 0x484   :  { %1433 = vmatprep.subr.bf16.mxu0 %v3079_v9  ;;  %1474 = vmatprep.subr.bf16.mxu1 %v3082_v10 }
 0x487   :  { %1434 = vmatpush1.bf16.msra.mxu0 %v3085_v11  ;;  %1475 = vmatpush1.bf16.msra.mxu1 %v3146_v0 }
 0x488   :  { %1435 = vmatprep.subr.bf16.mxu0 %v3089_v12  ;;  %1476 = vmatprep.subr.bf16.mxu1 %v3150_v47 }
 0x48b   :  { %1436 = vmatpush1.bf16.msra.mxu0 %v3093_v13  ;;  %1477 = vmatpush1.bf16.msra.mxu1 %v3154_v48 }
 0x48c   :  { %1437 = vmatprep.subr.bf16.mxu0 %v3097_v7  ;;  %1478 = vmatprep.subr.bf16.mxu1 %v3158_v21 }
 0x48f   :  { %1438 = vmatpush1.bf16.msra.mxu0 %v3161_v22  ;;  %1479 = vmatpush1.bf16.msra.mxu1 %v3164_v24 }
 0x490   :  { %1439 = vmatprep.subr.bf16.mxu0 %v3167_v25  ;;  %1480 = vmatprep.subr.bf16.mxu1 %v3170_v27 }
 0x493   :  { %1440 = vmatpush1.bf16.msra.mxu0 %v3173_v30  ;;  %1481 = vmatpush1.bf16.msra.mxu1 %v3176_v32 }
 0x494   :  { %1441 = vmatprep.subr.bf16.mxu0 %v3179_v33  ;;  %1482 = vmatprep.subr.bf16.mxu1 %v3182_v34 }
 0x497   :  { %1442 = vmatpush1.bf16.msra.mxu0 %v3185_v35  ;;  %1483 = vmatpush1.bf16.msra.mxu1 %v3188_v36 }
 0x498   :  { %1542 = vmatprep.subr.bf16.mxu0 %v3027_v1  ;;  %1583 = vmatprep.subr.bf16.mxu1 %v3112_v20  ;;  %v522_v1 = vld [vmem:[%s521_s2] ss:$8 sm:$0xf]  ;;  %s2301_s2 = sshll.u32 %s613_s7, 6 }
 0x499   :  { %v2100_v20 = vld [vmem:[%s1855_s0 + $0x20] ss:$8 sm:$0xf]  ;;  %s619_s10 = sadd.s32 %s2301_s2, %s616_s9  ;;  %s622_s0 = sshra.s32 %s3376_s30, 3 }
 0x49a   :  { %v533_v37 = vadd.f32 %v2100_v20, %v522_v1  ;;  %s2302_s12 = sshll.u32 %s622_s0, 6  ;;  %s620_s13 = scalar_lea.vmem [#allocation6], %s619_s10 }
 0x49b   :  { %s1878_s14 = sadd.s32 %s2302_s12, %s625_s11 }
 0x49c   :  { %535 = vst.msk [vmem:[#allocation2 + $0xc0] ss:$8 sm:$0xf] %vm2788_vm0, %v533_v37  ;;  %s1879_s3 = scalar_lea.vmem [#allocation6], %s1878_s14 }
 0x4a3   :  { %v1424_v29 = vld [vmem:[#allocation2 + $0xd0] sm:$0xff] }
 0x53a   :  { %v1346_v17 = vpop.f32.mrf.mxu0  ;;  %v1387_v18 = vpop.f32.mrf.mxu1 }
 0x53b   :  { %v1394_v41 = vadd.f32 %v1346_v17, %v1307_v16  ;;  %v1396_v40 = vadd.f32 %v1387_v18, %v1309_v28  ;;  %v1664_v28 = vld [vmem:[#allocation9 + $0x60] sm:$0xff] }
 0x53c   :  { %v1348_v55 = vpop.f32.mrf.mxu0  ;;  %v1389_v56 = vpop.f32.mrf.mxu1 }
 0x53d   :  { %v2197_v57 = vmul.f32 -1.442695, %v1394_v41  ;;  %v1395_v58 = vadd.f32 %v1348_v55, %v1308_v19  ;;  %v1397_v26 = vadd.f32 %v1389_v56, %v1310_v23  ;;  %v1666_v23 = vld [vmem:[#allocation9 + $0x70] sm:$0xff] }
 0x53e   :  { %v1350_v60 = vpop.f32.mrf.mxu0  ;;  %v1391_v61 = vpop.f32.mrf.mxu1 }
 0x53f   :  { %2492 = vpow2.f32 %v2197_v57  ;;  %v2199_v62 = vmul.f32 -1.442695, %v1395_v58  ;;  %v2198_v31 = vmul.f32 -1.442695, %v1397_v26  ;;  %v1665_v26 = vld [vmem:[#allocation9 + $0x68] sm:$0xff] }
 0x540   :  { %v1351_v63 = vpop.f32.mrf.mxu0  ;;  %v1392_v3 = vpop.f32.mrf.mxu1 }
 0x541   :  { %2494 = vpow2.f32 %v2199_v62  ;;  %v1667_v3 = vld [vmem:[#allocation9 + $0x78] sm:$0xff] }
 0x542   :  { %2496 = vpow2.f32 %v2198_v31  ;;  %v1663_v31 = vld [vmem:[#allocation9 + $0x58] sm:$0xff] }
 0x54c   :  { %v2493_v39 = vpop.eup %2492 }
 0x54d   :  { %v1401_v42 = vadd.f32 1.0, %v2493_v39  ;;  %v1662_v39 = vld [vmem:[#allocation9 + $0x50] sm:$0xff] }
 0x54e   :  { %v2495_v44 = vpop.eup %2494 }
 0x54f   :  { %2498 = vrcp.f32 %v1401_v42  ;;  %v1414_v45 = vadd.f32 1.0, %v2495_v44  ;;  %v2497_v59 = vpop.eup %2496  ;;  %v1660_v42 = vld [vmem:[#allocation9 + $0x40] sm:$0xff]  ;;  %v1659_v44 = vld [vmem:[#allocation9 + $0x38] sm:$0xff] }
 0x550   :  { %2500 = vtanh.f32 %v1396_v40  ;;  %v1408_v37 = vadd.f32 1.0, %v2497_v59  ;;  %v1661_v40 = vld [vmem:[#allocation9 + $0x48] sm:$0xff] }
 0x551   :  { %2502 = vrcp.f32 %v1414_v45  ;;  %v1658_v45 = vld [vmem:[#allocation9 + $0x30] sm:$0xff]  ;;  %v1657_v59 = vld [vmem:[#allocation9 + $0x28] sm:$0xff] }
 0x552   :  { %2504 = vrcp.f32 %v1408_v37  ;;  %v1653_v37 = vld [vmem:[#allocation9 + $0x8] sm:$0xff] }
 0x55c   :  { %v2499_v46 = vpop.eup %2498 }
 0x55d   :  { %v2501_v1 = vpop.eup %2500 }
 0x55e   :  { %v2503_v20 = vpop.eup %2502  ;;  %v1418_v38 = vmul.f32 %v2501_v1, %v2499_v46  ;;  %v1656_v46 = vld [vmem:[#allocation9 + $0x20] sm:$0xff]  ;;  %v1655_v1 = vld [vmem:[#allocation9 + $0x18] sm:$0xff] }
 0x55f   :  { %v1417_v14 = vmul.f32 %v2503_v20, %v3128_v43  ;;  %v2505_v16 = vpop.eup %2504  ;;  %v1654_v20 = vld [vmem:[#allocation9 + $0x10] sm:$0xff] }
 0x561   :  { %v3203_v15 = vadd.f32 %v1418_v38, %v1417_v14  ;;  %v1652_v38 = vld [vmem:[#allocation9] sm:$0xff] }
 0x563   :  { %2506 = vtanh.f32 %v3203_v15 }
 0x570   :  { %v2507_v17 = vpop.eup %2506 }
 0x571   :  { %v1421_v18 = vmul.f32 %v2507_v17, %v2505_v16 }
 0x573   :  { %v1426_v19 = vpack.c.bf16 %v1421_v18, %v1421_v18 }
 0x575   :  { %1460 = vmatmul.mubr.bf16.vlgmr.msra.gmra.mxu0 %v1426_v19  ;;  %1501 = vmatmul.mubr.bf16.vlgmr.msra.gmra.mxu1 %v1426_v19 }
 0x576   :  { %1543 = vmatpush1.bf16.msra.mxu0 %v3047_v49  ;;  %1584 = vmatpush1.bf16.msra.mxu1 %v3050_v51  ;;  %v588_v49 = vld [vmem:[%s587_s27] ss:$8 sm:$0xf] }
 0x577   :  { %1544 = vmatprep.subr.bf16.mxu0 %v3053_v50  ;;  %1585 = vmatprep.subr.bf16.mxu1 %v3056_v52  ;;  %v2133_v51 = vld [vmem:[%s1871_s6 + $0x20] ss:$8 sm:$0xf] }
 0x578   :  { %1574 = vmatprep.mubr.bf16.mxu0 %v2657_v2  ;;  %1615 = vmatprep.mubr.bf16.mxu1 %v2657_v2  ;;  %v3238_v2 = vld [vmem:[#allocation2 + $0xe0] sm:$0xff]  ;;  %v599_v50 = vadd.f32 %v2133_v51, %v588_v49 }
 0x579   :  { %v621_v52 = vld [vmem:[%s620_s13] ss:$8 sm:$0xf] }
 0x57a   :  { %1545 = vmatpush1.bf16.msra.mxu0 %v3061_v53  ;;  %1586 = vmatpush1.bf16.msra.mxu1 %v3064_v54  ;;  %601 = vst.msk [vmem:[#allocation2 + $0xe0] ss:$8 sm:$0xf] %vm2788_vm0, %v599_v50  ;;  %v2150_v53 = vld [vmem:[%s1879_s3 + $0x20] ss:$8 sm:$0xf] }
 0x57b   :  { %1546 = vmatprep.subr.bf16.mxu0 %v3067_v4  ;;  %1587 = vmatprep.subr.bf16.mxu1 %v3070_v5  ;;  %v632_v54 = vadd.f32 %v2150_v53, %v621_v52  ;;  %v1422_v4 = vld [vmem:[#allocation2 + $0xc0] sm:$0xff] }
 0x57d   :  { %634 = vst.msk [vmem:[#allocation2 + $0xe1] ss:$8 sm:$0xf] %vm2788_vm0, %v632_v54 }
 0x57e   :  { %1547 = vmatpush1.bf16.msra.mxu0 %v3073_v6  ;;  %1588 = vmatpush1.bf16.msra.mxu1 %v3076_v8  ;;  %v1423_v8 = vld [vmem:[#allocation2 + $0xc8] sm:$0xff] }
 0x57f   :  { %1548 = vmatprep.subr.bf16.mxu0 %v3079_v9  ;;  %1589 = vmatprep.subr.bf16.mxu1 %v3082_v10 }
 0x582   :  { %1549 = vmatpush1.bf16.msra.mxu0 %v3085_v11  ;;  %1590 = vmatpush1.bf16.msra.mxu1 %v3146_v0 }
 0x583   :  { %1550 = vmatprep.subr.bf16.mxu0 %v3089_v12  ;;  %1591 = vmatprep.subr.bf16.mxu1 %v3150_v47 }
 0x584   :  { %v1537_v14 = vld [vmem:[#allocation2 + $0xe0] sm:$0xff]  ;;  %v1538_v17 = vld [vmem:[#allocation2 + $0xe8] sm:$0xff] }
 0x586   :  { %1551 = vmatpush1.bf16.msra.mxu0 %v3093_v13  ;;  %1592 = vmatpush1.bf16.msra.mxu1 %v3154_v48 }
 0x587   :  { %1552 = vmatprep.subr.bf16.mxu0 %v3097_v7  ;;  %1593 = vmatprep.subr.bf16.mxu1 %v3158_v21  ;;  %v1425_v21 = vld [vmem:[#allocation2 + $0xd8] sm:$0xff] }
 0x58a   :  { %1553 = vmatpush1.bf16.msra.mxu0 %v3161_v22  ;;  %1594 = vmatpush1.bf16.msra.mxu1 %v3164_v24 }
 0x58b   :  { %1554 = vmatprep.subr.bf16.mxu0 %v3167_v25  ;;  %1595 = vmatprep.subr.bf16.mxu1 %v3170_v27 }
 0x58e   :  { %1555 = vmatpush1.bf16.msra.mxu0 %v3173_v30  ;;  %1596 = vmatpush1.bf16.msra.mxu1 %v3176_v32 }
 0x58f   :  { %1556 = vmatprep.subr.bf16.mxu0 %v3179_v33  ;;  %1597 = vmatprep.subr.bf16.mxu1 %v3182_v34 }
 0x592   :  { %1557 = vmatpush1.bf16.msra.mxu0 %v3185_v35  ;;  %1598 = vmatpush1.bf16.msra.mxu1 %v3188_v36 }
 0x593   :  { %2320 = vmatprep.subr.mxu0 %v3238_v2 }
 0x635   :  { %v1461_v5 = vpop.f32.mrf.mxu0  ;;  %v1502_v6 = vpop.f32.mrf.mxu1 }
 0x636   :  { %v1509_v9 = vadd.f32 %v1461_v5, %v1422_v4  ;;  %v1511_v27 = vadd.f32 %v1502_v6, %v1424_v29  ;;  %v1540_v6 = vld [vmem:[#allocation2 + $0xf8] sm:$0xff] }
 0x637   :  { %v1463_v10 = vpop.f32.mrf.mxu0  ;;  %v1504_v11 = vpop.f32.mrf.mxu1 }
 0x638   :  { %v2200_v12 = vmul.f32 -1.442695, %v1509_v9  ;;  %v1510_v13 = vadd.f32 %v1463_v10, %v1423_v8  ;;  %v1512_v22 = vadd.f32 %v1504_v11, %v1425_v21 }
 0x639   :  { %v1465_v7 = vpop.f32.mrf.mxu0  ;;  %v1506_v43 = vpop.f32.mrf.mxu1 }
 0x63a   :  { %2508 = vpow2.f32 %v2200_v12  ;;  %v2202_v0 = vmul.f32 -1.442695, %v1510_v13  ;;  %v2201_v24 = vmul.f32 -1.442695, %v1512_v22 }
 0x63b   :  { %v1466_v47 = vpop.f32.mrf.mxu0  ;;  %v1507_v48 = vpop.f32.mrf.mxu1 }
 0x63c   :  { %2510 = vpow2.f32 %v2202_v0 }
 0x63d   :  { %2512 = vpow2.f32 %v2201_v24 }
 0x647   :  { %v2509_v25 = vpop.eup %2508 }
 0x648   :  { %v1516_v30 = vadd.f32 1.0, %v2509_v25 }
 0x649   :  { %v2511_v32 = vpop.eup %2510 }
 0x64a   :  { %2514 = vrcp.f32 %v1516_v30  ;;  %v1529_v33 = vadd.f32 1.0, %v2511_v32  ;;  %v2513_v34 = vpop.eup %2512  ;;  %v2206_v32 = vld [vmem:[%s3281_s4] ss:$0 sm:$0xff] }
 0x64b   :  { %2516 = vtanh.f32 %v1511_v27  ;;  %v1523_v55 = vadd.f32 1.0, %v2513_v34 }
 0x64c   :  { %2518 = vrcp.f32 %v1529_v33 }
 0x64d   :  { %2520 = vrcp.f32 %v1523_v55 }
 0x657   :  { %v2515_v35 = vpop.eup %2514 }
 0x658   :  { %v2517_v36 = vpop.eup %2516 }
 0x659   :  { %v2519_v41 = vpop.eup %2518  ;;  %v1533_v56 = vmul.f32 %v2517_v36, %v2515_v35 }
 0x65a   :  { %v1532_v57 = vmul.f32 %v2519_v41, %v3203_v15  ;;  %v2521_v60 = vpop.eup %2520 }
 0x65c   :  { %v3251_v58 = vadd.f32 %v1533_v56, %v1532_v57 }
 0x65e   :  { %2522 = vtanh.f32 %v3251_v58 }
 0x66b   :  { %v2523_v61 = vpop.eup %2522 }
 0x66c   :  { %v1536_v62 = vmul.f32 %v2523_v61, %v2521_v60 }
 0x66e   :  { %v1541_v63 = vpack.c.bf16 %v1536_v62, %v1536_v62 }
 0x670   :  { %1575 = vmatmul.mubr.bf16.vlgmr.msra.gmra.mxu0 %v1541_v63  ;;  %1616 = vmatmul.mubr.bf16.vlgmr.msra.gmra.mxu1 %v1541_v63 }
 0x671   :  { %2321 = vmatpush3.msra.mxu0 %v1667_v3  ;;  %2352 = vmatprep.mubr.msk.f32.mxu0 %vm2659_vm1, %v3238_v2 }
 0x672   :  { %2322 = vmatprep.subr.mxu0 %v3238_v2 }
 0x673   :  { %2323 = vmatpush3.msra.mxu0 %v1666_v23 }
 0x674   :  { %2324 = vmatprep.subr.mxu0 %v3238_v2 }
 0x675   :  { %2325 = vmatpush3.msra.mxu0 %v1665_v26 }
 0x676   :  { %2326 = vmatprep.subr.mxu0 %v3238_v2 }
 0x677   :  { %2327 = vmatpush3.msra.mxu0 %v1664_v28 }
 0x678   :  { %2328 = vmatprep.subr.mxu0 %v3238_v2 }
 0x679   :  { %2329 = vmatpush3.msra.mxu0 %v1663_v31 }
 0x67a   :  { %2330 = vmatprep.subr.mxu0 %v3238_v2 }
 0x67b   :  { %2331 = vmatpush3.msra.mxu0 %v1662_v39 }
 0x67c   :  { %2332 = vmatprep.subr.mxu0 %v3238_v2 }
 0x67d   :  { %2333 = vmatpush3.msra.mxu0 %v1661_v40 }
 0x67e   :  { %2334 = vmatprep.subr.mxu0 %v3238_v2 }
 0x67f   :  { %2335 = vmatpush3.msra.mxu0 %v1660_v42 }
 0x680   :  { %2336 = vmatprep.subr.mxu0 %v3238_v2 }
 0x681   :  { %2337 = vmatpush3.msra.mxu0 %v1659_v44 }
 0x682   :  { %2338 = vmatprep.subr.mxu0 %v3238_v2 }
 0x683   :  { %2339 = vmatpush3.msra.mxu0 %v1658_v45 }
 0x684   :  { %2340 = vmatprep.subr.mxu0 %v3238_v2 }
 0x685   :  { %2341 = vmatpush3.msra.mxu0 %v1657_v59 }
 0x686   :  { %2342 = vmatprep.subr.mxu0 %v3238_v2 }
 0x687   :  { %2343 = vmatpush3.msra.mxu0 %v1656_v46 }
 0x688   :  { %2344 = vmatprep.subr.mxu0 %v3238_v2 }
 0x689   :  { %2345 = vmatpush3.msra.mxu0 %v1655_v1 }
 0x68a   :  { %2346 = vmatprep.subr.mxu0 %v3238_v2 }
 0x68b   :  { %2347 = vmatpush3.msra.mxu0 %v1654_v20 }
 0x68c   :  { %2348 = vmatprep.subr.mxu0 %v3238_v2 }
 0x68d   :  { %2349 = vmatpush3.msra.mxu0 %v1653_v37 }
 0x68e   :  { %2350 = vmatprep.subr.mxu0 %v3238_v2  ;;  %v1539_v2 = vld [vmem:[#allocation2 + $0xf0] sm:$0xff] }
 0x68f   :  { %2351 = vmatpush3.msra.mxu0 %v1652_v38 }
 0x730   :  { %v1576_v15 = vpop.f32.mrf.mxu0  ;;  %v1617_v16 = vpop.f32.mrf.mxu1 }
 0x731   :  { %v1624_v18 = vadd.f32 %v1576_v15, %v1537_v14  ;;  %v1626_v11 = vadd.f32 %v1617_v16, %v1539_v2 }
 0x732   :  { %v1578_v19 = vpop.f32.mrf.mxu0  ;;  %v1619_v49 = vpop.f32.mrf.mxu1 }
 0x733   :  { %v2203_v51 = vmul.f32 -1.442695, %v1624_v18  ;;  %v1625_v50 = vadd.f32 %v1578_v19, %v1538_v17  ;;  %v1627_v8 = vadd.f32 %v1619_v49, %v1540_v6 }
 0x734   :  { %v1580_v52 = vpop.f32.mrf.mxu0  ;;  %v1621_v53 = vpop.f32.mrf.mxu1 }
 0x735   :  { %2524 = vpow2.f32 %v2203_v51  ;;  %v2205_v54 = vmul.f32 -1.442695, %v1625_v50  ;;  %v2204_v9 = vmul.f32 -1.442695, %v1627_v8 }
 0x736   :  { %v1581_v4 = vpop.f32.mrf.mxu0  ;;  %v1622_v5 = vpop.f32.mrf.mxu1 }
 0x737   :  { %2526 = vpow2.f32 %v2205_v54 }
 0x738   :  { %2528 = vpow2.f32 %v2204_v9 }
 0x742   :  { %v2525_v10 = vpop.eup %2524 }
 0x743   :  { %v1631_v12 = vadd.f32 1.0, %v2525_v10 }
 0x744   :  { %v2527_v13 = vpop.eup %2526 }
 0x745   :  { %2530 = vrcp.f32 %v1631_v12  ;;  %v1644_v7 = vadd.f32 1.0, %v2527_v13  ;;  %v2529_v43 = vpop.eup %2528 }
 0x746   :  { %2532 = vtanh.f32 %v1626_v11  ;;  %v1638_v21 = vadd.f32 1.0, %v2529_v43 }
 0x747   :  { %2534 = vrcp.f32 %v1644_v7 }
 0x748   :  { %2536 = vrcp.f32 %v1638_v21 }
 0x752   :  { %v2531_v0 = vpop.eup %2530 }
 0x753   :  { %v2533_v47 = vpop.eup %2532 }
 0x754   :  { %v2535_v48 = vpop.eup %2534  ;;  %v1648_v22 = vmul.f32 %v2533_v47, %v2531_v0 }
 0x755   :  { %v1647_v29 = vmul.f32 %v2535_v48, %v3251_v58  ;;  %v2537_v25 = vpop.eup %2536 }
 0x757   :  { %v1649_v24 = vadd.f32 %v1648_v22, %v1647_v29 }
 0x759   :  { %2538 = vtanh.f32 %v1649_v24 }
 0x766   :  { %v2539_v27 = vpop.eup %2538 }
 0x767   :  { %v1651_v30 = vmul.f32 %v2539_v27, %v2537_v25 }
 0x769   :  { %2353 = vmatmul.mubr.f32.vlgmr.msra.gmra.mxu0 %v1651_v30 }
 0x829   :  { %v1741_v33 = vpop.f32.mrf.mxu0 }
 0x82a   :  { %v1742_v34 = vadd.f32 %v2206_v32, %v1741_v33 }
 0x82b   :  { %v2354_v35 = vpop.f32.mrf.mxu0 }
 0x82c   :  { %1745 = vst [vmem:[%s3282_s5] sm:$0xff] %v1742_v34 }
 0x82d   :  { %1750 = vsyncpa [#allocation4], 1 }
 0x82e   :  { %1751 = vsyncpa [#allocation8], 1 }
 0x82f   :  { %1752 = vsyncpa [#allocation5], 1 }

</bundles_post_ra>
